<compile_context>
chip_gen: v7x
topology: tpu7x:2x2x1
jax: 0.10.0
libtpu: 0.0.40
codegen_flags: <defaults>
</compile_context>

<pallas_src>
import functools

import jax
import jax.numpy as jnp
from jax.experimental import pallas as pl
from jax.experimental.pallas import tpu as pltpu


# ----------------------------------------------------------------------------
# helpers
# ----------------------------------------------------------------------------
def _round_up(x, m):
    return ((x + m - 1) // m) * m


def _mish_f32(y):
    # Mish(y) = y * tanh(softplus(y)); single-exp form:
    # tanh(log(1 + e^y)) = ((1+t)^2 - 1) / ((1+t)^2 + 1),  t = e^y.
    t = jnp.exp(jnp.minimum(y, 20.0))
    u2 = (1.0 + t) * (1.0 + t)
    r = (u2 - 1.0) / (u2 + 1.0)
    r = jnp.where(y > 20.0, 1.0, r)
    return y * r


# ----------------------------------------------------------------------------
# Pallas kernel: one ConvTranspose2d(k=4, s=2, p=1) block, sub-pixel (phase)
# decomposition.  Grid = (batch,).  Per output phase-row p, the four taps are
# shifted slices of the VMEM-resident padded feature map, each multiplied by
# its (Cin, Npad) weight slice and accumulated in f32.  Optional fused tanh
# epilogue and fused per-column sum / sum-of-squares (BatchNorm statistics).
# ----------------------------------------------------------------------------
def _convt_block_kernel(x_ref, w_ref, o_ref, *maybe_st, cin, act, with_stats):
    # x_ref: (Hin+2, Win+2, Cin)  zero-padded NHWC feature map (bf16)
    # w_ref: (4*Cin, Npad)        rows (dh, dw, ci), cols (r, s, co) + zero pad
    # o_ref: (Hp1, Wp1, Npad)     conv output in phase layout
    # maybe_st: optional (2, Npad) f32 — column sums / sums of squares
    hp1, wp1, npad = o_ref.shape

    def step(p, carry):
        s1, s2 = carry
        acc = jnp.dot(x_ref[p, 0:wp1, :], w_ref[0:cin, :],
                      preferred_element_type=jnp.float32)
        acc += jnp.dot(x_ref[p, 1:wp1 + 1, :], w_ref[cin:2 * cin, :],
                       preferred_element_type=jnp.float32)
        acc += jnp.dot(x_ref[p + 1, 0:wp1, :], w_ref[2 * cin:3 * cin, :],
                       preferred_element_type=jnp.float32)
        acc += jnp.dot(x_ref[p + 1, 1:wp1 + 1, :], w_ref[3 * cin:4 * cin, :],
                       preferred_element_type=jnp.float32)
        if act == "tanh":
            acc = jnp.tanh(acc)
        o_ref[p] = acc.astype(o_ref.dtype)
        if with_stats:
            s1 = s1 + jnp.sum(acc, axis=0, keepdims=True)
            s2 = s2 + jnp.sum(acc * acc, axis=0, keepdims=True)
        return s1, s2

    zeros = jnp.zeros((1, npad), jnp.float32)
    s1, s2 = jax.lax.fori_loop(0, hp1, step, (zeros, zeros))

    if with_stats:
        st_ref = maybe_st[0]
        st_ref[0:1, :] = s1
        st_ref[1:2, :] = s2


def convt_block(s, w_mat, *, cin, npad, last):
    """s: (B, Hin+2, Win+2, Cin) bf16 padded feature map; w_mat: (4*Cin, Npad).
    Returns (O, stats): O (B, Hp1, Wp1, Npad), stats (B, 2, Npad) or None."""
    B, hp, wp, _ = s.shape
    hp1, wp1 = hp - 1, wp - 1
    out_dtype = jnp.float32 if last else jnp.bfloat16

    kernel = functools.partial(_convt_block_kernel, cin=cin,
                               act="tanh" if last else None,
                               with_stats=not last)

    in_specs = [
        pl.BlockSpec((None, hp, wp, cin), lambda b: (b, 0, 0, 0)),
        pl.BlockSpec((4 * cin, npad), lambda b: (0, 0)),      # VMEM-resident W
    ]
    o_spec = pl.BlockSpec((None, hp1, wp1, npad), lambda b: (b, 0, 0, 0))
    o_shape = jax.ShapeDtypeStruct((B, hp1, wp1, npad), out_dtype)

    if last:
        out_specs, out_shape = o_spec, o_shape
    else:
        out_specs = (o_spec,
                     pl.BlockSpec((None, 2, npad), lambda b: (b, 0, 0)))
        out_shape = (o_shape,
                     jax.ShapeDtypeStruct((B, 2, npad), jnp.float32))

    res = pl.pallas_call(
        kernel,
        grid=(B,),
        in_specs=in_specs,
        out_specs=out_specs,
        out_shape=out_shape,
        compiler_params=pltpu.CompilerParams(
            dimension_semantics=("parallel",),
            vmem_limit_bytes=32 * 1024 * 1024),
    )(s, w_mat)

    if last:
        return res, None
    return res


# ----------------------------------------------------------------------------
# ConvTranspose2d(k=4, s=2, p=1) phase weight:
#   output(2p-1+r, 2q-1+s, co) = sum_{dh,dw,ci} xpad(p+dh, q+dw, ci)
#                                  * w[ci, co, KH[r][dh], KW[s][dw]]
#   with KH = KW = [[2, 0], [3, 1]].
# ----------------------------------------------------------------------------
def _convt_weight_phase(w_t):
    """(Cin, Cout, 4, 4) ConvTranspose2d weight -> (4*Cin, 4*Cout) matrix,
    rows ordered (dh, dw, cin), cols ordered (r, s, cout)."""
    cin, cout = w_t.shape[0], w_t.shape[1]
    tap = jnp.array([[2, 0], [3, 1]], dtype=jnp.int32)   # [phase, offset] -> k
    w = w_t[:, :, tap, :]          # (ci, co, r, dh, kw)
    w = w[..., tap]                # (ci, co, r, dh, s, dw)
    w = jnp.transpose(w, (3, 5, 0, 2, 4, 1))             # (dh, dw, ci, r, s, co)
    return w.reshape(4 * cin, 4 * cout)


# ----------------------------------------------------------------------------
# inter-block XLA glue (single fused elementwise + transpose pass)
# ----------------------------------------------------------------------------
def _phase_to_next_input(o, cout, scale, bias):
    """Conv output (B, Hp1, Wp1, Npad) -> next block's padded input
    (B, 2*Hp1, 2*Wp1, cout) bf16.  Uses pad(crop(slab)) == border-zeroed slab,
    with the BN affine + Mish fused into the same pass."""
    B, hp1, wp1, _ = o.shape
    y6 = o[..., :4 * cout].astype(jnp.float32).reshape(B, hp1, wp1, 2, 2, cout)
    y6 = _mish_f32(y6 * scale + bias)
    slab = jnp.transpose(y6, (0, 1, 3, 2, 4, 5)).reshape(B, 2 * hp1, 2 * wp1,
                                                         cout)
    rows = jnp.arange(2 * hp1).reshape(1, -1, 1, 1)
    cols = jnp.arange(2 * wp1).reshape(1, 1, -1, 1)
    interior = ((rows > 0) & (rows < 2 * hp1 - 1) &
                (cols > 0) & (cols < 2 * wp1 - 1))
    return jnp.where(interior, slab, 0.0).astype(jnp.bfloat16)


def _phase_to_image(o, cout):
    """Last block: depth-to-space + crop -> (B, 2H, 2W, cout) f32."""
    B, hp1, wp1, _ = o.shape
    y6 = o[..., :4 * cout].astype(jnp.float32).reshape(B, hp1, wp1, 2, 2, cout)
    slab = jnp.transpose(y6, (0, 1, 3, 2, 4, 5)).reshape(B, 2 * hp1, 2 * wp1,
                                                         cout)
    return slab[:, 1:2 * hp1 - 1, 1:2 * wp1 - 1, :]


def _bn_batch_stats(stats, o, cout):
    """Exact per-channel batch mean / biased var of the CROPPED conv output.
    `stats` are in-kernel sums over the full phase output; the border rows/cols
    dropped by the crop are corrected from thin slices of `o`."""
    B, hp1, wp1, _ = o.shape
    h, w = hp1 - 1, wp1 - 1
    tot = jnp.sum(stats, axis=0)                                   # (2, Npad)
    tot_sum = jnp.sum(tot[0, :4 * cout].reshape(2, 2, cout), axis=(0, 1))
    tot_sq = jnp.sum(tot[1, :4 * cout].reshape(2, 2, cout), axis=(0, 1))

    y6 = o[..., :4 * cout].astype(jnp.float32).reshape(B, hp1, wp1, 2, 2, cout)
    borders = (y6[:, 0, :, 0, :, :], y6[:, h, :, 1, :, :],
               y6[:, :, 0, :, 0, :], y6[:, :, w, :, 1, :])
    corners = (y6[:, 0, 0, 0, 0, :], y6[:, 0, w, 0, 1, :],
               y6[:, h, 0, 1, 0, :], y6[:, h, w, 1, 1, :])
    b_sum = sum(jnp.sum(v, axis=(0, 1, 2)) for v in borders)
    b_sq = sum(jnp.sum(v * v, axis=(0, 1, 2)) for v in borders)
    c_sum = sum(jnp.sum(v, axis=0) for v in corners)
    c_sq = sum(jnp.sum(v * v, axis=0) for v in corners)

    count = B * (2 * h) * (2 * w)
    mean = (tot_sum - b_sum + c_sum) / count
    ex2 = (tot_sq - b_sq + c_sq) / count
    var = jnp.maximum(ex2 - mean * mean, 0.0)
    return mean, var


# ----------------------------------------------------------------------------
# parameter init (deterministic, synthetic)
# ----------------------------------------------------------------------------
def _spectral_normalize(w, key, n_iter=1):
    w_mat = w.reshape(w.shape[0], -1)
    u = jax.random.normal(key, (w_mat.shape[0],), dtype=jnp.float32)
    u = u / (jnp.linalg.norm(u) + 1e-12)
    v = None
    for _ in range(n_iter):
        v = w_mat.T @ u
        v = v / (jnp.linalg.norm(v) + 1e-12)
        u = w_mat @ v
        u = u / (jnp.linalg.norm(u) + 1e-12)
    sigma = u @ (w_mat @ v)
    return w / sigma


def init_params(key, channels=32, latent_dim=16):
    dims = [channels, channels // 2, channels // 4, channels // 8,
            channels // 8, 3]
    ks = jax.random.split(key, 2 + 2 * 5)
    params = {
        "lin_w": jax.random.normal(ks[0], (channels * 4 * 7, latent_dim),
                                   jnp.float32) * 0.05,
        "lin_b": jax.random.normal(ks[1], (channels * 4 * 7,),
                                   jnp.float32) * 0.05,
        "blocks": [],
    }
    for i in range(5):
        cin, cout = dims[i], dims[i + 1]
        w = jax.random.normal(ks[2 + 2 * i], (cin, cout, 4, 4),
                              jnp.float32) * 0.05
        w = _spectral_normalize(w, ks[3 + 2 * i])
        blk = {"w": w}
        if i < 4:                              # last block: normalize=False
            blk["gamma"] = jnp.ones((cout,), jnp.float32)
            blk["beta"] = jnp.zeros((cout,), jnp.float32)
        params["blocks"].append(blk)
    return params


# ----------------------------------------------------------------------------
# forward pass
# ----------------------------------------------------------------------------
def cars_cnn_generator(params, x):
    """x: (B, latent_dim) -> (B, 3, 4*2^5, 7*2^5) NCHW f32 (like PyTorch)."""
    B = x.shape[0]
    channels = params["lin_w"].shape[0] // (4 * 7)

    # Linear layer: tiny -> plain XLA (a Pallas kernel here is pure overhead).
    y = x @ params["lin_w"].T + params["lin_b"]
    y = y.reshape(B, channels, 4, 7)                     # 'b (c h w) -> b c h w'
    f0 = jnp.transpose(y, (0, 2, 3, 1)).astype(jnp.bfloat16)   # NHWC bf16
    s = jnp.pad(f0, ((0, 0), (1, 1), (1, 1), (0, 0)))          # (B, 6, 9, C)

    n_blocks = len(params["blocks"])
    out = None
    for i, blk in enumerate(params["blocks"]):
        last = i == n_blocks - 1
        w_t = blk["w"]
        cin, cout = w_t.shape[0], w_t.shape[1]

        npad = _round_up(4 * cout, 128)                  # lane-dense N
        w_mat = _convt_weight_phase(w_t)
        if npad != 4 * cout:
            w_mat = jnp.pad(w_mat, ((0, 0), (0, npad - 4 * cout)))
        w_mat = w_mat.astype(jnp.bfloat16)

        o, stats = convt_block(s, w_mat, cin=cin, npad=npad, last=last)

        if last:
            out = _phase_to_image(o, cout)               # f32, tanh already fused
        else:
            # BatchNorm2d (module default = training mode): batch statistics
            # over (N, H, W) per channel, biased variance, eps=1e-5.
            mean, var = _bn_batch_stats(stats, o, cout)
            inv = blk["gamma"] / jnp.sqrt(var + 1e-5)
            s = _phase_to_next_input(o, cout, inv, blk["beta"] - mean * inv)

    return jnp.transpose(out, (0, 3, 1, 2))              # back to NCHW


# ----------------------------------------------------------------------------
if __name__ == "__main__":
    key = jax.random.PRNGKey(0)
    k_params, k_x = jax.random.split(key)

    # small shapes: channels=32 (vs 512), latent_dim=16 (vs 100), batch=2
    channels, latent_dim, batch = 32, 16, 2
    params = init_params(k_params, channels=channels, latent_dim=latent_dim)
    x = jax.random.normal(k_x, (batch, latent_dim), jnp.float32)

    forward = jax.jit(functools.partial(cars_cnn_generator, params))
    out = jax.block_until_ready(forward(x))

    expected = (batch, 3, 4 * 2 ** 5, 7 * 2 ** 5)        # (2, 3, 128, 224)
    assert out.shape == expected, (out.shape, expected)
    assert out.dtype == jnp.float32
    assert bool(jnp.all(jnp.isfinite(out)))
    assert bool(jnp.all(jnp.abs(out) <= 1.0 + 1e-5))     # tanh output range

    print("KERNEL_OK")
</pallas_src>

<mosaic_0001>
module attributes {stable_mosaic.version = 11 : i64} {
  func.func @_convt_block_kernel(%arg0: i32, %arg1: memref<1x6x9x32xbf16, #tpu.memory_space<vmem>>, %arg2: memref<128x128xbf16, #tpu.memory_space<vmem>>, %arg3: memref<1x5x8x128xbf16, #tpu.memory_space<vmem>>, %arg4: memref<1x2x128xf32, #tpu.memory_space<vmem>>) attributes {dimension_semantics = [#tpu.dimension_semantics<parallel>], iteration_bounds = array<i64: 2>, scalar_prefetch = 0 : i64, scratch_operands = 0 : i64, tpu.core_type = #tpu.core_type<tc>, window_params = [{transform_indices = @transform_0, window_bounds = array<i64: 1, 6, 9, 32>}, {pipeline_mode = #tpu.pipeline_mode<synchronous>, transform_indices = @transform_1, window_bounds = array<i64: 128, 128>}, {transform_indices = @transform_2, window_bounds = array<i64: 1, 5, 8, 128>}, {transform_indices = @transform_3, window_bounds = array<i64: 1, 2, 128>}]} {
    %cst = arith.constant 0.000000e+00 : f32
    %0 = vector.broadcast %cst : f32 to vector<1x128xf32>
    %c0_i32 = arith.constant 0 : i32
    %c5_i32 = arith.constant 5 : i32
    %1 = arith.addi %c0_i32, %c5_i32 : i32
    %c1_i32 = arith.constant 1 : i32
    %2:2 = scf.for %arg5 = %c0_i32 to %1 step %c1_i32 iter_args(%arg6 = %0, %arg7 = %0) -> (vector<1x128xf32>, vector<1x128xf32>)  : i32 {
      %c0_5 = arith.constant 0 : index
      %9 = arith.index_cast %arg5 : i32 to index
      %c0_6 = arith.constant 0 : index
      %c0_7 = arith.constant 0 : index
      %10 = vector.load %arg1[%c0_5, %9, %c0_6, %c0_7] : memref<1x6x9x32xbf16, #tpu.memory_space<vmem>>, vector<1x1x8x32xbf16>
      %11 = vector.shape_cast %10 : vector<1x1x8x32xbf16> to vector<8x32xbf16>
      %c0_8 = arith.constant 0 : index
      %c0_9 = arith.constant 0 : index
      %12 = vector.load %arg2[%c0_8, %c0_9] : memref<128x128xbf16, #tpu.memory_space<vmem>>, vector<32x128xbf16>
      %cst_10 = arith.constant dense<0.000000e+00> : vector<8x128xf32>
      %13 = tpu.matmul %11, %12, %cst_10 {dimension_numbers = #tpu.dot_dimension_numbers<[1], [0], [0], [1], [0, 0, 1, 1], [], []>} : vector<8x32xbf16>, vector<32x128xbf16>, vector<8x128xf32> -> vector<8x128xf32>
      %c0_11 = arith.constant 0 : index
      %14 = arith.index_cast %arg5 : i32 to index
      %c1_12 = arith.constant 1 : index
      %c0_13 = arith.constant 0 : index
      %15 = vector.load %arg1[%c0_11, %14, %c1_12, %c0_13] : memref<1x6x9x32xbf16, #tpu.memory_space<vmem>>, vector<1x1x8x32xbf16>
      %16 = vector.shape_cast %15 : vector<1x1x8x32xbf16> to vector<8x32xbf16>
      %c32 = arith.constant 32 : index
      %c0_14 = arith.constant 0 : index
      %17 = vector.load %arg2[%c32, %c0_14] : memref<128x128xbf16, #tpu.memory_space<vmem>>, vector<32x128xbf16>
      %cst_15 = arith.constant dense<0.000000e+00> : vector<8x128xf32>
      %18 = tpu.matmul %16, %17, %cst_15 {dimension_numbers = #tpu.dot_dimension_numbers<[1], [0], [0], [1], [0, 0, 1, 1], [], []>} : vector<8x32xbf16>, vector<32x128xbf16>, vector<8x128xf32> -> vector<8x128xf32>
      %19 = arith.addf %13, %18 : vector<8x128xf32>
      %c1_i32_16 = arith.constant 1 : i32
      %20 = arith.addi %arg5, %c1_i32_16 : i32
      %c0_17 = arith.constant 0 : index
      %21 = arith.index_cast %20 : i32 to index
      %c0_18 = arith.constant 0 : index
      %c0_19 = arith.constant 0 : index
      %22 = vector.load %arg1[%c0_17, %21, %c0_18, %c0_19] : memref<1x6x9x32xbf16, #tpu.memory_space<vmem>>, vector<1x1x8x32xbf16>
      %23 = vector.shape_cast %22 : vector<1x1x8x32xbf16> to vector<8x32xbf16>
      %c64 = arith.constant 64 : index
      %c0_20 = arith.constant 0 : index
      %24 = vector.load %arg2[%c64, %c0_20] : memref<128x128xbf16, #tpu.memory_space<vmem>>, vector<32x128xbf16>
      %cst_21 = arith.constant dense<0.000000e+00> : vector<8x128xf32>
      %25 = tpu.matmul %23, %24, %cst_21 {dimension_numbers = #tpu.dot_dimension_numbers<[1], [0], [0], [1], [0, 0, 1, 1], [], []>} : vector<8x32xbf16>, vector<32x128xbf16>, vector<8x128xf32> -> vector<8x128xf32>
      %26 = arith.addf %19, %25 : vector<8x128xf32>
      %c1_i32_22 = arith.constant 1 : i32
      %27 = arith.addi %arg5, %c1_i32_22 : i32
      %c0_23 = arith.constant 0 : index
      %28 = arith.index_cast %27 : i32 to index
      %c1_24 = arith.constant 1 : index
      %c0_25 = arith.constant 0 : index
      %29 = vector.load %arg1[%c0_23, %28, %c1_24, %c0_25] : memref<1x6x9x32xbf16, #tpu.memory_space<vmem>>, vector<1x1x8x32xbf16>
      %30 = vector.shape_cast %29 : vector<1x1x8x32xbf16> to vector<8x32xbf16>
      %c96 = arith.constant 96 : index
      %c0_26 = arith.constant 0 : index
      %31 = vector.load %arg2[%c96, %c0_26] : memref<128x128xbf16, #tpu.memory_space<vmem>>, vector<32x128xbf16>
      %cst_27 = arith.constant dense<0.000000e+00> : vector<8x128xf32>
      %32 = tpu.matmul %30, %31, %cst_27 {dimension_numbers = #tpu.dot_dimension_numbers<[1], [0], [0], [1], [0, 0, 1, 1], [], []>} : vector<8x32xbf16>, vector<32x128xbf16>, vector<8x128xf32> -> vector<8x128xf32>
      %33 = arith.addf %26, %32 : vector<8x128xf32>
      %34 = arith.truncf %33 : vector<8x128xf32> to vector<8x128xbf16>
      %c0_28 = arith.constant 0 : index
      %35 = arith.index_cast %arg5 : i32 to index
      %c0_29 = arith.constant 0 : index
      %c0_30 = arith.constant 0 : index
      %36 = vector.load %arg3[%c0_28, %35, %c0_29, %c0_30] : memref<1x5x8x128xbf16, #tpu.memory_space<vmem>>, vector<1x1x8x128xbf16>
      %37 = vector.shape_cast %36 : vector<1x1x8x128xbf16> to vector<8x128xbf16>
      %38 = vector.shape_cast %34 : vector<8x128xbf16> to vector<1x1x8x128xbf16>
      tpu.vector_store %arg3[%c0_28, %35, %c0_29, %c0_30], %38 {strides = array<i32>} : memref<1x5x8x128xbf16, #tpu.memory_space<vmem>>, vector<1x1x8x128xbf16>,
      %cst_31 = arith.constant dense<0.000000e+00> : vector<128xf32>
      %39 = vector.multi_reduction <add>, %33, %cst_31 [0] : vector<8x128xf32> to vector<128xf32>
      %40 = vector.shape_cast %39 : vector<128xf32> to vector<1x128xf32>
      %41 = arith.addf %arg6, %40 : vector<1x128xf32>
      %42 = arith.mulf %33, %33 : vector<8x128xf32>
      %cst_32 = arith.constant dense<0.000000e+00> : vector<128xf32>
      %43 = vector.multi_reduction <add>, %42, %cst_32 [0] : vector<8x128xf32> to vector<128xf32>
      %44 = vector.shape_cast %43 : vector<128xf32> to vector<1x128xf32>
      %45 = arith.addf %arg7, %44 : vector<1x128xf32>
      scf.yield %41, %45 : vector<1x128xf32>, vector<1x128xf32>
    }
    %c5_i32_0 = arith.constant 5 : i32
    %c0 = arith.constant 0 : index
    %c0_1 = arith.constant 0 : index
    %c0_2 = arith.constant 0 : index
    %3 = vector.load %arg4[%c0, %c0_1, %c0_2] : memref<1x2x128xf32, #tpu.memory_space<vmem>>, vector<1x1x128xf32>
    %4 = vector.shape_cast %3 : vector<1x1x128xf32> to vector<1x128xf32>
    %5 = vector.shape_cast %2#0 : vector<1x128xf32> to vector<1x1x128xf32>
    tpu.vector_store %arg4[%c0, %c0_1, %c0_2], %5 {strides = array<i32>} : memref<1x2x128xf32, #tpu.memory_space<vmem>>, vector<1x1x128xf32>,
    %c0_3 = arith.constant 0 : index
    %c1 = arith.constant 1 : index
    %c0_4 = arith.constant 0 : index
    %6 = vector.load %arg4[%c0_3, %c1, %c0_4] : memref<1x2x128xf32, #tpu.memory_space<vmem>>, vector<1x1x128xf32>
    %7 = vector.shape_cast %6 : vector<1x1x128xf32> to vector<1x128xf32>
    %8 = vector.shape_cast %2#1 : vector<1x128xf32> to vector<1x1x128xf32>
    tpu.vector_store %arg4[%c0_3, %c1, %c0_4], %8 {strides = array<i32>} : memref<1x2x128xf32, #tpu.memory_space<vmem>>, vector<1x1x128xf32>,
    return
  }
  func.func @transform_0(%arg0: i32) -> (i32, i32, i32, i32) {
    %c0_i32 = arith.constant 0 : i32
    %c0_i32_0 = arith.constant 0 : i32
    %c0_i32_1 = arith.constant 0 : i32
    %c0_i32_2 = arith.constant 0 : i32
    return %arg0, %c0_i32, %c0_i32_0, %c0_i32_1 : i32, i32, i32, i32
  }
  func.func @transform_1(%arg0: i32) -> (i32, i32) {
    %c0_i32 = arith.constant 0 : i32
    %c0_i32_0 = arith.constant 0 : i32
    %c0_i32_1 = arith.constant 0 : i32
    return %c0_i32, %c0_i32_0 : i32, i32
  }
  func.func @transform_2(%arg0: i32) -> (i32, i32, i32, i32) {
    %c0_i32 = arith.constant 0 : i32
    %c0_i32_0 = arith.constant 0 : i32
    %c0_i32_1 = arith.constant 0 : i32
    %c0_i32_2 = arith.constant 0 : i32
    return %arg0, %c0_i32, %c0_i32_0, %c0_i32_1 : i32, i32, i32, i32
  }
  func.func @transform_3(%arg0: i32) -> (i32, i32, i32) {
    %c0_i32 = arith.constant 0 : i32
    %c0_i32_0 = arith.constant 0 : i32
    %c0_i32_1 = arith.constant 0 : i32
    return %arg0, %c0_i32, %c0_i32_0 : i32, i32, i32
  }
}

module attributes {stable_mosaic.version = 11 : i64} {
  func.func @_convt_block_kernel(%arg0: i32, %arg1: memref<1x10x16x16xbf16, #tpu.memory_space<vmem>>, %arg2: memref<64x128xbf16, #tpu.memory_space<vmem>>, %arg3: memref<1x9x15x128xbf16, #tpu.memory_space<vmem>>, %arg4: memref<1x2x128xf32, #tpu.memory_space<vmem>>) attributes {dimension_semantics = [#tpu.dimension_semantics<parallel>], iteration_bounds = array<i64: 2>, scalar_prefetch = 0 : i64, scratch_operands = 0 : i64, tpu.core_type = #tpu.core_type<tc>, window_params = [{transform_indices = @transform_0, window_bounds = array<i64: 1, 10, 16, 16>}, {pipeline_mode = #tpu.pipeline_mode<synchronous>, transform_indices = @transform_1, window_bounds = array<i64: 64, 128>}, {transform_indices = @transform_2, window_bounds = array<i64: 1, 9, 15, 128>}, {transform_indices = @transform_3, window_bounds = array<i64: 1, 2, 128>}]} {
    %cst = arith.constant 0.000000e+00 : f32
    %0 = vector.broadcast %cst : f32 to vector<1x128xf32>
    %c0_i32 = arith.constant 0 : i32
    %c9_i32 = arith.constant 9 : i32
    %1 = arith.addi %c0_i32, %c9_i32 : i32
    %c1_i32 = arith.constant 1 : i32
    %2:2 = scf.for %arg5 = %c0_i32 to %1 step %c1_i32 iter_args(%arg6 = %0, %arg7 = %0) -> (vector<1x128xf32>, vector<1x128xf32>)  : i32 {
      %c0_5 = arith.constant 0 : index
      %9 = arith.index_cast %arg5 : i32 to index
      %c0_6 = arith.constant 0 : index
      %c0_7 = arith.constant 0 : index
      %10 = vector.load %arg1[%c0_5, %9, %c0_6, %c0_7] : memref<1x10x16x16xbf16, #tpu.memory_space<vmem>>, vector<1x1x15x16xbf16>
      %11 = vector.shape_cast %10 : vector<1x1x15x16xbf16> to vector<15x16xbf16>
      %c0_8 = arith.constant 0 : index
      %c0_9 = arith.constant 0 : index
      %12 = vector.load %arg2[%c0_8, %c0_9] : memref<64x128xbf16, #tpu.memory_space<vmem>>, vector<16x128xbf16>
      %cst_10 = arith.constant dense<0.000000e+00> : vector<15x128xf32>
      %13 = tpu.matmul %11, %12, %cst_10 {dimension_numbers = #tpu.dot_dimension_numbers<[1], [0], [0], [1], [0, 0, 1, 1], [], []>} : vector<15x16xbf16>, vector<16x128xbf16>, vector<15x128xf32> -> vector<15x128xf32>
      %c0_11 = arith.constant 0 : index
      %14 = arith.index_cast %arg5 : i32 to index
      %c1_12 = arith.constant 1 : index
      %c0_13 = arith.constant 0 : index
      %15 = vector.load %arg1[%c0_11, %14, %c1_12, %c0_13] : memref<1x10x16x16xbf16, #tpu.memory_space<vmem>>, vector<1x1x15x16xbf16>
      %16 = vector.shape_cast %15 : vector<1x1x15x16xbf16> to vector<15x16xbf16>
      %c16 = arith.constant 16 : index
      %c0_14 = arith.constant 0 : index
      %17 = vector.load %arg2[%c16, %c0_14] : memref<64x128xbf16, #tpu.memory_space<vmem>>, vector<16x128xbf16>
      %cst_15 = arith.constant dense<0.000000e+00> : vector<15x128xf32>
      %18 = tpu.matmul %16, %17, %cst_15 {dimension_numbers = #tpu.dot_dimension_numbers<[1], [0], [0], [1], [0, 0, 1, 1], [], []>} : vector<15x16xbf16>, vector<16x128xbf16>, vector<15x128xf32> -> vector<15x128xf32>
      %19 = arith.addf %13, %18 : vector<15x128xf32>
      %c1_i32_16 = arith.constant 1 : i32
      %20 = arith.addi %arg5, %c1_i32_16 : i32
      %c0_17 = arith.constant 0 : index
      %21 = arith.index_cast %20 : i32 to index
      %c0_18 = arith.constant 0 : index
      %c0_19 = arith.constant 0 : index
      %22 = vector.load %arg1[%c0_17, %21, %c0_18, %c0_19] : memref<1x10x16x16xbf16, #tpu.memory_space<vmem>>, vector<1x1x15x16xbf16>
      %23 = vector.shape_cast %22 : vector<1x1x15x16xbf16> to vector<15x16xbf16>
      %c32 = arith.constant 32 : index
      %c0_20 = arith.constant 0 : index
      %24 = vector.load %arg2[%c32, %c0_20] : memref<64x128xbf16, #tpu.memory_space<vmem>>, vector<16x128xbf16>
      %cst_21 = arith.constant dense<0.000000e+00> : vector<15x128xf32>
      %25 = tpu.matmul %23, %24, %cst_21 {dimension_numbers = #tpu.dot_dimension_numbers<[1], [0], [0], [1], [0, 0, 1, 1], [], []>} : vector<15x16xbf16>, vector<16x128xbf16>, vector<15x128xf32> -> vector<15x128xf32>
      %26 = arith.addf %19, %25 : vector<15x128xf32>
      %c1_i32_22 = arith.constant 1 : i32
      %27 = arith.addi %arg5, %c1_i32_22 : i32
      %c0_23 = arith.constant 0 : index
      %28 = arith.index_cast %27 : i32 to index
      %c1_24 = arith.constant 1 : index
      %c0_25 = arith.constant 0 : index
      %29 = vector.load %arg1[%c0_23, %28, %c1_24, %c0_25] : memref<1x10x16x16xbf16, #tpu.memory_space<vmem>>, vector<1x1x15x16xbf16>
      %30 = vector.shape_cast %29 : vector<1x1x15x16xbf16> to vector<15x16xbf16>
      %c48 = arith.constant 48 : index
      %c0_26 = arith.constant 0 : index
      %31 = vector.load %arg2[%c48, %c0_26] : memref<64x128xbf16, #tpu.memory_space<vmem>>, vector<16x128xbf16>
      %cst_27 = arith.constant dense<0.000000e+00> : vector<15x128xf32>
      %32 = tpu.matmul %30, %31, %cst_27 {dimension_numbers = #tpu.dot_dimension_numbers<[1], [0], [0], [1], [0, 0, 1, 1], [], []>} : vector<15x16xbf16>, vector<16x128xbf16>, vector<15x128xf32> -> vector<15x128xf32>
      %33 = arith.addf %26, %32 : vector<15x128xf32>
      %34 = arith.truncf %33 : vector<15x128xf32> to vector<15x128xbf16>
      %c0_28 = arith.constant 0 : index
      %35 = arith.index_cast %arg5 : i32 to index
      %c0_29 = arith.constant 0 : index
      %c0_30 = arith.constant 0 : index
      %36 = vector.load %arg3[%c0_28, %35, %c0_29, %c0_30] : memref<1x9x15x128xbf16, #tpu.memory_space<vmem>>, vector<1x1x15x128xbf16>
      %37 = vector.shape_cast %36 : vector<1x1x15x128xbf16> to vector<15x128xbf16>
      %38 = vector.shape_cast %34 : vector<15x128xbf16> to vector<1x1x15x128xbf16>
      tpu.vector_store %arg3[%c0_28, %35, %c0_29, %c0_30], %38 {strides = array<i32>} : memref<1x9x15x128xbf16, #tpu.memory_space<vmem>>, vector<1x1x15x128xbf16>,
      %cst_31 = arith.constant dense<0.000000e+00> : vector<128xf32>
      %39 = vector.multi_reduction <add>, %33, %cst_31 [0] : vector<15x128xf32> to vector<128xf32>
      %40 = vector.shape_cast %39 : vector<128xf32> to vector<1x128xf32>
      %41 = arith.addf %arg6, %40 : vector<1x128xf32>
      %42 = arith.mulf %33, %33 : vector<15x128xf32>
      %cst_32 = arith.constant dense<0.000000e+00> : vector<128xf32>
      %43 = vector.multi_reduction <add>, %42, %cst_32 [0] : vector<15x128xf32> to vector<128xf32>
      %44 = vector.shape_cast %43 : vector<128xf32> to vector<1x128xf32>
      %45 = arith.addf %arg7, %44 : vector<1x128xf32>
      scf.yield %41, %45 : vector<1x128xf32>, vector<1x128xf32>
    }
    %c9_i32_0 = arith.constant 9 : i32
    %c0 = arith.constant 0 : index
    %c0_1 = arith.constant 0 : index
    %c0_2 = arith.constant 0 : index
    %3 = vector.load %arg4[%c0, %c0_1, %c0_2] : memref<1x2x128xf32, #tpu.memory_space<vmem>>, vector<1x1x128xf32>
    %4 = vector.shape_cast %3 : vector<1x1x128xf32> to vector<1x128xf32>
    %5 = vector.shape_cast %2#0 : vector<1x128xf32> to vector<1x1x128xf32>
    tpu.vector_store %arg4[%c0, %c0_1, %c0_2], %5 {strides = array<i32>} : memref<1x2x128xf32, #tpu.memory_space<vmem>>, vector<1x1x128xf32>,
    %c0_3 = arith.constant 0 : index
    %c1 = arith.constant 1 : index
    %c0_4 = arith.constant 0 : index
    %6 = vector.load %arg4[%c0_3, %c1, %c0_4] : memref<1x2x128xf32, #tpu.memory_space<vmem>>, vector<1x1x128xf32>
    %7 = vector.shape_cast %6 : vector<1x1x128xf32> to vector<1x128xf32>
    %8 = vector.shape_cast %2#1 : vector<1x128xf32> to vector<1x1x128xf32>
    tpu.vector_store %arg4[%c0_3, %c1, %c0_4], %8 {strides = array<i32>} : memref<1x2x128xf32, #tpu.memory_space<vmem>>, vector<1x1x128xf32>,
    return
  }
  func.func @transform_0(%arg0: i32) -> (i32, i32, i32, i32) {
    %c0_i32 = arith.constant 0 : i32
    %c0_i32_0 = arith.constant 0 : i32
    %c0_i32_1 = arith.constant 0 : i32
    %c0_i32_2 = arith.constant 0 : i32
    return %arg0, %c0_i32, %c0_i32_0, %c0_i32_1 : i32, i32, i32, i32
  }
  func.func @transform_1(%arg0: i32) -> (i32, i32) {
    %c0_i32 = arith.constant 0 : i32
    %c0_i32_0 = arith.constant 0 : i32
    %c0_i32_1 = arith.constant 0 : i32
    return %c0_i32, %c0_i32_0 : i32, i32
  }
  func.func @transform_2(%arg0: i32) -> (i32, i32, i32, i32) {
    %c0_i32 = arith.constant 0 : i32
    %c0_i32_0 = arith.constant 0 : i32
    %c0_i32_1 = arith.constant 0 : i32
    %c0_i32_2 = arith.constant 0 : i32
    return %arg0, %c0_i32, %c0_i32_0, %c0_i32_1 : i32, i32, i32, i32
  }
  func.func @transform_3(%arg0: i32) -> (i32, i32, i32) {
    %c0_i32 = arith.constant 0 : i32
    %c0_i32_0 = arith.constant 0 : i32
    %c0_i32_1 = arith.constant 0 : i32
    return %arg0, %c0_i32, %c0_i32_0 : i32, i32, i32
  }
}

module attributes {stable_mosaic.version = 11 : i64} {
  func.func @_convt_block_kernel(%arg0: i32, %arg1: memref<1x18x30x8xbf16, #tpu.memory_space<vmem>>, %arg2: memref<32x128xbf16, #tpu.memory_space<vmem>>, %arg3: memref<1x17x29x128xbf16, #tpu.memory_space<vmem>>, %arg4: memref<1x2x128xf32, #tpu.memory_space<vmem>>) attributes {dimension_semantics = [#tpu.dimension_semantics<parallel>], iteration_bounds = array<i64: 2>, scalar_prefetch = 0 : i64, scratch_operands = 0 : i64, tpu.core_type = #tpu.core_type<tc>, window_params = [{transform_indices = @transform_0, window_bounds = array<i64: 1, 18, 30, 8>}, {pipeline_mode = #tpu.pipeline_mode<synchronous>, transform_indices = @transform_1, window_bounds = array<i64: 32, 128>}, {transform_indices = @transform_2, window_bounds = array<i64: 1, 17, 29, 128>}, {transform_indices = @transform_3, window_bounds = array<i64: 1, 2, 128>}]} {
    %cst = arith.constant 0.000000e+00 : f32
    %0 = vector.broadcast %cst : f32 to vector<1x128xf32>
    %c0_i32 = arith.constant 0 : i32
    %c17_i32 = arith.constant 17 : i32
    %1 = arith.addi %c0_i32, %c17_i32 : i32
    %c1_i32 = arith.constant 1 : i32
    %2:2 = scf.for %arg5 = %c0_i32 to %1 step %c1_i32 iter_args(%arg6 = %0, %arg7 = %0) -> (vector<1x128xf32>, vector<1x128xf32>)  : i32 {
      %c0_5 = arith.constant 0 : index
      %9 = arith.index_cast %arg5 : i32 to index
      %c0_6 = arith.constant 0 : index
      %c0_7 = arith.constant 0 : index
      %10 = vector.load %arg1[%c0_5, %9, %c0_6, %c0_7] : memref<1x18x30x8xbf16, #tpu.memory_space<vmem>>, vector<1x1x29x8xbf16>
      %11 = vector.shape_cast %10 : vector<1x1x29x8xbf16> to vector<29x8xbf16>
      %c0_8 = arith.constant 0 : index
      %c0_9 = arith.constant 0 : index
      %12 = vector.load %arg2[%c0_8, %c0_9] : memref<32x128xbf16, #tpu.memory_space<vmem>>, vector<8x128xbf16>
      %cst_10 = arith.constant dense<0.000000e+00> : vector<29x128xf32>
      %13 = tpu.matmul %11, %12, %cst_10 {dimension_numbers = #tpu.dot_dimension_numbers<[1], [0], [0], [1], [0, 0, 1, 1], [], []>} : vector<29x8xbf16>, vector<8x128xbf16>, vector<29x128xf32> -> vector<29x128xf32>
      %c0_11 = arith.constant 0 : index
      %14 = arith.index_cast %arg5 : i32 to index
      %c1_12 = arith.constant 1 : index
      %c0_13 = arith.constant 0 : index
      %15 = vector.load %arg1[%c0_11, %14, %c1_12, %c0_13] : memref<1x18x30x8xbf16, #tpu.memory_space<vmem>>, vector<1x1x29x8xbf16>
      %16 = vector.shape_cast %15 : vector<1x1x29x8xbf16> to vector<29x8xbf16>
      %c8 = arith.constant 8 : index
      %c0_14 = arith.constant 0 : index
      %17 = vector.load %arg2[%c8, %c0_14] : memref<32x128xbf16, #tpu.memory_space<vmem>>, vector<8x128xbf16>
      %cst_15 = arith.constant dense<0.000000e+00> : vector<29x128xf32>
      %18 = tpu.matmul %16, %17, %cst_15 {dimension_numbers = #tpu.dot_dimension_numbers<[1], [0], [0], [1], [0, 0, 1, 1], [], []>} : vector<29x8xbf16>, vector<8x128xbf16>, vector<29x128xf32> -> vector<29x128xf32>
      %19 = arith.addf %13, %18 : vector<29x128xf32>
      %c1_i32_16 = arith.constant 1 : i32
      %20 = arith.addi %arg5, %c1_i32_16 : i32
      %c0_17 = arith.constant 0 : index
      %21 = arith.index_cast %20 : i32 to index
      %c0_18 = arith.constant 0 : index
      %c0_19 = arith.constant 0 : index
      %22 = vector.load %arg1[%c0_17, %21, %c0_18, %c0_19] : memref<1x18x30x8xbf16, #tpu.memory_space<vmem>>, vector<1x1x29x8xbf16>
      %23 = vector.shape_cast %22 : vector<1x1x29x8xbf16> to vector<29x8xbf16>
      %c16 = arith.constant 16 : index
      %c0_20 = arith.constant 0 : index
      %24 = vector.load %arg2[%c16, %c0_20] : memref<32x128xbf16, #tpu.memory_space<vmem>>, vector<8x128xbf16>
      %cst_21 = arith.constant dense<0.000000e+00> : vector<29x128xf32>
      %25 = tpu.matmul %23, %24, %cst_21 {dimension_numbers = #tpu.dot_dimension_numbers<[1], [0], [0], [1], [0, 0, 1, 1], [], []>} : vector<29x8xbf16>, vector<8x128xbf16>, vector<29x128xf32> -> vector<29x128xf32>
      %26 = arith.addf %19, %25 : vector<29x128xf32>
      %c1_i32_22 = arith.constant 1 : i32
      %27 = arith.addi %arg5, %c1_i32_22 : i32
      %c0_23 = arith.constant 0 : index
      %28 = arith.index_cast %27 : i32 to index
      %c1_24 = arith.constant 1 : index
      %c0_25 = arith.constant 0 : index
      %29 = vector.load %arg1[%c0_23, %28, %c1_24, %c0_25] : memref<1x18x30x8xbf16, #tpu.memory_space<vmem>>, vector<1x1x29x8xbf16>
      %30 = vector.shape_cast %29 : vector<1x1x29x8xbf16> to vector<29x8xbf16>
      %c24 = arith.constant 24 : index
      %c0_26 = arith.constant 0 : index
      %31 = vector.load %arg2[%c24, %c0_26] : memref<32x128xbf16, #tpu.memory_space<vmem>>, vector<8x128xbf16>
      %cst_27 = arith.constant dense<0.000000e+00> : vector<29x128xf32>
      %32 = tpu.matmul %30, %31, %cst_27 {dimension_numbers = #tpu.dot_dimension_numbers<[1], [0], [0], [1], [0, 0, 1, 1], [], []>} : vector<29x8xbf16>, vector<8x128xbf16>, vector<29x128xf32> -> vector<29x128xf32>
      %33 = arith.addf %26, %32 : vector<29x128xf32>
      %34 = arith.truncf %33 : vector<29x128xf32> to vector<29x128xbf16>
      %c0_28 = arith.constant 0 : index
      %35 = arith.index_cast %arg5 : i32 to index
      %c0_29 = arith.constant 0 : index
      %c0_30 = arith.constant 0 : index
      %36 = vector.load %arg3[%c0_28, %35, %c0_29, %c0_30] : memref<1x17x29x128xbf16, #tpu.memory_space<vmem>>, vector<1x1x29x128xbf16>
      %37 = vector.shape_cast %36 : vector<1x1x29x128xbf16> to vector<29x128xbf16>
      %38 = vector.shape_cast %34 : vector<29x128xbf16> to vector<1x1x29x128xbf16>
      tpu.vector_store %arg3[%c0_28, %35, %c0_29, %c0_30], %38 {strides = array<i32>} : memref<1x17x29x128xbf16, #tpu.memory_space<vmem>>, vector<1x1x29x128xbf16>,
      %cst_31 = arith.constant dense<0.000000e+00> : vector<128xf32>
      %39 = vector.multi_reduction <add>, %33, %cst_31 [0] : vector<29x128xf32> to vector<128xf32>
      %40 = vector.shape_cast %39 : vector<128xf32> to vector<1x128xf32>
      %41 = arith.addf %arg6, %40 : vector<1x128xf32>
      %42 = arith.mulf %33, %33 : vector<29x128xf32>
      %cst_32 = arith.constant dense<0.000000e+00> : vector<128xf32>
      %43 = vector.multi_reduction <add>, %42, %cst_32 [0] : vector<29x128xf32> to vector<128xf32>
      %44 = vector.shape_cast %43 : vector<128xf32> to vector<1x128xf32>
      %45 = arith.addf %arg7, %44 : vector<1x128xf32>
      scf.yield %41, %45 : vector<1x128xf32>, vector<1x128xf32>
    }
    %c17_i32_0 = arith.constant 17 : i32
    %c0 = arith.constant 0 : index
    %c0_1 = arith.constant 0 : index
    %c0_2 = arith.constant 0 : index
    %3 = vector.load %arg4[%c0, %c0_1, %c0_2] : memref<1x2x128xf32, #tpu.memory_space<vmem>>, vector<1x1x128xf32>
    %4 = vector.shape_cast %3 : vector<1x1x128xf32> to vector<1x128xf32>
    %5 = vector.shape_cast %2#0 : vector<1x128xf32> to vector<1x1x128xf32>
    tpu.vector_store %arg4[%c0, %c0_1, %c0_2], %5 {strides = array<i32>} : memref<1x2x128xf32, #tpu.memory_space<vmem>>, vector<1x1x128xf32>,
    %c0_3 = arith.constant 0 : index
    %c1 = arith.constant 1 : index
    %c0_4 = arith.constant 0 : index
    %6 = vector.load %arg4[%c0_3, %c1, %c0_4] : memref<1x2x128xf32, #tpu.memory_space<vmem>>, vector<1x1x128xf32>
    %7 = vector.shape_cast %6 : vector<1x1x128xf32> to vector<1x128xf32>
    %8 = vector.shape_cast %2#1 : vector<1x128xf32> to vector<1x1x128xf32>
    tpu.vector_store %arg4[%c0_3, %c1, %c0_4], %8 {strides = array<i32>} : memref<1x2x128xf32, #tpu.memory_space<vmem>>, vector<1x1x128xf32>,
    return
  }
  func.func @transform_0(%arg0: i32) -> (i32, i32, i32, i32) {
    %c0_i32 = arith.constant 0 : i32
    %c0_i32_0 = arith.constant 0 : i32
    %c0_i32_1 = arith.constant 0 : i32
    %c0_i32_2 = arith.constant 0 : i32
    return %arg0, %c0_i32, %c0_i32_0, %c0_i32_1 : i32, i32, i32, i32
  }
  func.func @transform_1(%arg0: i32) -> (i32, i32) {
    %c0_i32 = arith.constant 0 : i32
    %c0_i32_0 = arith.constant 0 : i32
    %c0_i32_1 = arith.constant 0 : i32
    return %c0_i32, %c0_i32_0 : i32, i32
  }
  func.func @transform_2(%arg0: i32) -> (i32, i32, i32, i32) {
    %c0_i32 = arith.constant 0 : i32
    %c0_i32_0 = arith.constant 0 : i32
    %c0_i32_1 = arith.constant 0 : i32
    %c0_i32_2 = arith.constant 0 : i32
    return %arg0, %c0_i32, %c0_i32_0, %c0_i32_1 : i32, i32, i32, i32
  }
  func.func @transform_3(%arg0: i32) -> (i32, i32, i32) {
    %c0_i32 = arith.constant 0 : i32
    %c0_i32_0 = arith.constant 0 : i32
    %c0_i32_1 = arith.constant 0 : i32
    return %arg0, %c0_i32, %c0_i32_0 : i32, i32, i32
  }
}

module attributes {stable_mosaic.version = 11 : i64} {
  func.func @_convt_block_kernel(%arg0: i32, %arg1: memref<1x34x58x4xbf16, #tpu.memory_space<vmem>>, %arg2: memref<16x128xbf16, #tpu.memory_space<vmem>>, %arg3: memref<1x33x57x128xbf16, #tpu.memory_space<vmem>>, %arg4: memref<1x2x128xf32, #tpu.memory_space<vmem>>) attributes {dimension_semantics = [#tpu.dimension_semantics<parallel>], iteration_bounds = array<i64: 2>, scalar_prefetch = 0 : i64, scratch_operands = 0 : i64, tpu.core_type = #tpu.core_type<tc>, window_params = [{transform_indices = @transform_0, window_bounds = array<i64: 1, 34, 58, 4>}, {pipeline_mode = #tpu.pipeline_mode<synchronous>, transform_indices = @transform_1, window_bounds = array<i64: 16, 128>}, {transform_indices = @transform_2, window_bounds = array<i64: 1, 33, 57, 128>}, {transform_indices = @transform_3, window_bounds = array<i64: 1, 2, 128>}]} {
    %cst = arith.constant 0.000000e+00 : f32
    %0 = vector.broadcast %cst : f32 to vector<1x128xf32>
    %c0_i32 = arith.constant 0 : i32
    %c33_i32 = arith.constant 33 : i32
    %1 = arith.addi %c0_i32, %c33_i32 : i32
    %c1_i32 = arith.constant 1 : i32
    %2:2 = scf.for %arg5 = %c0_i32 to %1 step %c1_i32 iter_args(%arg6 = %0, %arg7 = %0) -> (vector<1x128xf32>, vector<1x128xf32>)  : i32 {
      %c0_5 = arith.constant 0 : index
      %9 = arith.index_cast %arg5 : i32 to index
      %c0_6 = arith.constant 0 : index
      %c0_7 = arith.constant 0 : index
      %10 = vector.load %arg1[%c0_5, %9, %c0_6, %c0_7] : memref<1x34x58x4xbf16, #tpu.memory_space<vmem>>, vector<1x1x57x4xbf16>
      %11 = vector.shape_cast %10 : vector<1x1x57x4xbf16> to vector<57x4xbf16>
      %c0_8 = arith.constant 0 : index
      %c0_9 = arith.constant 0 : index
      %12 = vector.load %arg2[%c0_8, %c0_9] : memref<16x128xbf16, #tpu.memory_space<vmem>>, vector<4x128xbf16>
      %cst_10 = arith.constant dense<0.000000e+00> : vector<57x128xf32>
      %13 = tpu.matmul %11, %12, %cst_10 {dimension_numbers = #tpu.dot_dimension_numbers<[1], [0], [0], [1], [0, 0, 1, 1], [], []>} : vector<57x4xbf16>, vector<4x128xbf16>, vector<57x128xf32> -> vector<57x128xf32>
      %c0_11 = arith.constant 0 : index
      %14 = arith.index_cast %arg5 : i32 to index
      %c1_12 = arith.constant 1 : index
      %c0_13 = arith.constant 0 : index
      %15 = vector.load %arg1[%c0_11, %14, %c1_12, %c0_13] : memref<1x34x58x4xbf16, #tpu.memory_space<vmem>>, vector<1x1x57x4xbf16>
      %16 = vector.shape_cast %15 : vector<1x1x57x4xbf16> to vector<57x4xbf16>
      %c4 = arith.constant 4 : index
      %c0_14 = arith.constant 0 : index
      %17 = vector.load %arg2[%c4, %c0_14] : memref<16x128xbf16, #tpu.memory_space<vmem>>, vector<4x128xbf16>
      %cst_15 = arith.constant dense<0.000000e+00> : vector<57x128xf32>
      %18 = tpu.matmul %16, %17, %cst_15 {dimension_numbers = #tpu.dot_dimension_numbers<[1], [0], [0], [1], [0, 0, 1, 1], [], []>} : vector<57x4xbf16>, vector<4x128xbf16>, vector<57x128xf32> -> vector<57x128xf32>
      %19 = arith.addf %13, %18 : vector<57x128xf32>
      %c1_i32_16 = arith.constant 1 : i32
      %20 = arith.addi %arg5, %c1_i32_16 : i32
      %c0_17 = arith.constant 0 : index
      %21 = arith.index_cast %20 : i32 to index
      %c0_18 = arith.constant 0 : index
      %c0_19 = arith.constant 0 : index
      %22 = vector.load %arg1[%c0_17, %21, %c0_18, %c0_19] : memref<1x34x58x4xbf16, #tpu.memory_space<vmem>>, vector<1x1x57x4xbf16>
      %23 = vector.shape_cast %22 : vector<1x1x57x4xbf16> to vector<57x4xbf16>
      %c8 = arith.constant 8 : index
      %c0_20 = arith.constant 0 : index
      %24 = vector.load %arg2[%c8, %c0_20] : memref<16x128xbf16, #tpu.memory_space<vmem>>, vector<4x128xbf16>
      %cst_21 = arith.constant dense<0.000000e+00> : vector<57x128xf32>
      %25 = tpu.matmul %23, %24, %cst_21 {dimension_numbers = #tpu.dot_dimension_numbers<[1], [0], [0], [1], [0, 0, 1, 1], [], []>} : vector<57x4xbf16>, vector<4x128xbf16>, vector<57x128xf32> -> vector<57x128xf32>
      %26 = arith.addf %19, %25 : vector<57x128xf32>
      %c1_i32_22 = arith.constant 1 : i32
      %27 = arith.addi %arg5, %c1_i32_22 : i32
      %c0_23 = arith.constant 0 : index
      %28 = arith.index_cast %27 : i32 to index
      %c1_24 = arith.constant 1 : index
      %c0_25 = arith.constant 0 : index
      %29 = vector.load %arg1[%c0_23, %28, %c1_24, %c0_25] : memref<1x34x58x4xbf16, #tpu.memory_space<vmem>>, vector<1x1x57x4xbf16>
      %30 = vector.shape_cast %29 : vector<1x1x57x4xbf16> to vector<57x4xbf16>
      %c12 = arith.constant 12 : index
      %c0_26 = arith.constant 0 : index
      %31 = vector.load %arg2[%c12, %c0_26] : memref<16x128xbf16, #tpu.memory_space<vmem>>, vector<4x128xbf16>
      %cst_27 = arith.constant dense<0.000000e+00> : vector<57x128xf32>
      %32 = tpu.matmul %30, %31, %cst_27 {dimension_numbers = #tpu.dot_dimension_numbers<[1], [0], [0], [1], [0, 0, 1, 1], [], []>} : vector<57x4xbf16>, vector<4x128xbf16>, vector<57x128xf32> -> vector<57x128xf32>
      %33 = arith.addf %26, %32 : vector<57x128xf32>
      %34 = arith.truncf %33 : vector<57x128xf32> to vector<57x128xbf16>
      %c0_28 = arith.constant 0 : index
      %35 = arith.index_cast %arg5 : i32 to index
      %c0_29 = arith.constant 0 : index
      %c0_30 = arith.constant 0 : index
      %36 = vector.load %arg3[%c0_28, %35, %c0_29, %c0_30] : memref<1x33x57x128xbf16, #tpu.memory_space<vmem>>, vector<1x1x57x128xbf16>
      %37 = vector.shape_cast %36 : vector<1x1x57x128xbf16> to vector<57x128xbf16>
      %38 = vector.shape_cast %34 : vector<57x128xbf16> to vector<1x1x57x128xbf16>
      tpu.vector_store %arg3[%c0_28, %35, %c0_29, %c0_30], %38 {strides = array<i32>} : memref<1x33x57x128xbf16, #tpu.memory_space<vmem>>, vector<1x1x57x128xbf16>,
      %cst_31 = arith.constant dense<0.000000e+00> : vector<128xf32>
      %39 = vector.multi_reduction <add>, %33, %cst_31 [0] : vector<57x128xf32> to vector<128xf32>
      %40 = vector.shape_cast %39 : vector<128xf32> to vector<1x128xf32>
      %41 = arith.addf %arg6, %40 : vector<1x128xf32>
      %42 = arith.mulf %33, %33 : vector<57x128xf32>
      %cst_32 = arith.constant dense<0.000000e+00> : vector<128xf32>
      %43 = vector.multi_reduction <add>, %42, %cst_32 [0] : vector<57x128xf32> to vector<128xf32>
      %44 = vector.shape_cast %43 : vector<128xf32> to vector<1x128xf32>
      %45 = arith.addf %arg7, %44 : vector<1x128xf32>
      scf.yield %41, %45 : vector<1x128xf32>, vector<1x128xf32>
    }
    %c33_i32_0 = arith.constant 33 : i32
    %c0 = arith.constant 0 : index
    %c0_1 = arith.constant 0 : index
    %c0_2 = arith.constant 0 : index
    %3 = vector.load %arg4[%c0, %c0_1, %c0_2] : memref<1x2x128xf32, #tpu.memory_space<vmem>>, vector<1x1x128xf32>
    %4 = vector.shape_cast %3 : vector<1x1x128xf32> to vector<1x128xf32>
    %5 = vector.shape_cast %2#0 : vector<1x128xf32> to vector<1x1x128xf32>
    tpu.vector_store %arg4[%c0, %c0_1, %c0_2], %5 {strides = array<i32>} : memref<1x2x128xf32, #tpu.memory_space<vmem>>, vector<1x1x128xf32>,
    %c0_3 = arith.constant 0 : index
    %c1 = arith.constant 1 : index
    %c0_4 = arith.constant 0 : index
    %6 = vector.load %arg4[%c0_3, %c1, %c0_4] : memref<1x2x128xf32, #tpu.memory_space<vmem>>, vector<1x1x128xf32>
    %7 = vector.shape_cast %6 : vector<1x1x128xf32> to vector<1x128xf32>
    %8 = vector.shape_cast %2#1 : vector<1x128xf32> to vector<1x1x128xf32>
    tpu.vector_store %arg4[%c0_3, %c1, %c0_4], %8 {strides = array<i32>} : memref<1x2x128xf32, #tpu.memory_space<vmem>>, vector<1x1x128xf32>,
    return
  }
  func.func @transform_0(%arg0: i32) -> (i32, i32, i32, i32) {
    %c0_i32 = arith.constant 0 : i32
    %c0_i32_0 = arith.constant 0 : i32
    %c0_i32_1 = arith.constant 0 : i32
    %c0_i32_2 = arith.constant 0 : i32
    return %arg0, %c0_i32, %c0_i32_0, %c0_i32_1 : i32, i32, i32, i32
  }
  func.func @transform_1(%arg0: i32) -> (i32, i32) {
    %c0_i32 = arith.constant 0 : i32
    %c0_i32_0 = arith.constant 0 : i32
    %c0_i32_1 = arith.constant 0 : i32
    return %c0_i32, %c0_i32_0 : i32, i32
  }
  func.func @transform_2(%arg0: i32) -> (i32, i32, i32, i32) {
    %c0_i32 = arith.constant 0 : i32
    %c0_i32_0 = arith.constant 0 : i32
    %c0_i32_1 = arith.constant 0 : i32
    %c0_i32_2 = arith.constant 0 : i32
    return %arg0, %c0_i32, %c0_i32_0, %c0_i32_1 : i32, i32, i32, i32
  }
  func.func @transform_3(%arg0: i32) -> (i32, i32, i32) {
    %c0_i32 = arith.constant 0 : i32
    %c0_i32_0 = arith.constant 0 : i32
    %c0_i32_1 = arith.constant 0 : i32
    return %arg0, %c0_i32, %c0_i32_0 : i32, i32, i32
  }
}

module attributes {stable_mosaic.version = 11 : i64} {
  func.func @_convt_block_kernel(%arg0: i32, %arg1: memref<1x66x114x4xbf16, #tpu.memory_space<vmem>>, %arg2: memref<16x128xbf16, #tpu.memory_space<vmem>>, %arg3: memref<1x65x113x128xf32, #tpu.memory_space<vmem>>) attributes {dimension_semantics = [#tpu.dimension_semantics<parallel>], iteration_bounds = array<i64: 2>, scalar_prefetch = 0 : i64, scratch_operands = 0 : i64, tpu.core_type = #tpu.core_type<tc>, window_params = [{transform_indices = @transform_0, window_bounds = array<i64: 1, 66, 114, 4>}, {pipeline_mode = #tpu.pipeline_mode<synchronous>, transform_indices = @transform_1, window_bounds = array<i64: 16, 128>}, {transform_indices = @transform_2, window_bounds = array<i64: 1, 65, 113, 128>}]} {
    %c0_i32 = arith.constant 0 : i32
    %c65_i32 = arith.constant 65 : i32
    %0 = arith.addi %c0_i32, %c65_i32 : i32
    %c1_i32 = arith.constant 1 : i32
    scf.for %arg4 = %c0_i32 to %0 step %c1_i32  : i32 {
      %c0 = arith.constant 0 : index
      %1 = arith.index_cast %arg4 : i32 to index
      %c0_1 = arith.constant 0 : index
      %c0_2 = arith.constant 0 : index
      %2 = vector.load %arg1[%c0, %1, %c0_1, %c0_2] : memref<1x66x114x4xbf16, #tpu.memory_space<vmem>>, vector<1x1x113x4xbf16>
      %3 = vector.shape_cast %2 : vector<1x1x113x4xbf16> to vector<113x4xbf16>
      %c0_3 = arith.constant 0 : index
      %c0_4 = arith.constant 0 : index
      %4 = vector.load %arg2[%c0_3, %c0_4] : memref<16x128xbf16, #tpu.memory_space<vmem>>, vector<4x128xbf16>
      %cst = arith.constant dense<0.000000e+00> : vector<113x128xf32>
      %5 = tpu.matmul %3, %4, %cst {dimension_numbers = #tpu.dot_dimension_numbers<[1], [0], [0], [1], [0, 0, 1, 1], [], []>} : vector<113x4xbf16>, vector<4x128xbf16>, vector<113x128xf32> -> vector<113x128xf32>
      %c0_5 = arith.constant 0 : index
      %6 = arith.index_cast %arg4 : i32 to index
      %c1 = arith.constant 1 : index
      %c0_6 = arith.constant 0 : index
      %7 = vector.load %arg1[%c0_5, %6, %c1, %c0_6] : memref<1x66x114x4xbf16, #tpu.memory_space<vmem>>, vector<1x1x113x4xbf16>
      %8 = vector.shape_cast %7 : vector<1x1x113x4xbf16> to vector<113x4xbf16>
      %c4 = arith.constant 4 : index
      %c0_7 = arith.constant 0 : index
      %9 = vector.load %arg2[%c4, %c0_7] : memref<16x128xbf16, #tpu.memory_space<vmem>>, vector<4x128xbf16>
      %cst_8 = arith.constant dense<0.000000e+00> : vector<113x128xf32>
      %10 = tpu.matmul %8, %9, %cst_8 {dimension_numbers = #tpu.dot_dimension_numbers<[1], [0], [0], [1], [0, 0, 1, 1], [], []>} : vector<113x4xbf16>, vector<4x128xbf16>, vector<113x128xf32> -> vector<113x128xf32>
      %11 = arith.addf %5, %10 : vector<113x128xf32>
      %c1_i32_9 = arith.constant 1 : i32
      %12 = arith.addi %arg4, %c1_i32_9 : i32
      %c0_10 = arith.constant 0 : index
      %13 = arith.index_cast %12 : i32 to index
      %c0_11 = arith.constant 0 : index
      %c0_12 = arith.constant 0 : index
      %14 = vector.load %arg1[%c0_10, %13, %c0_11, %c0_12] : memref<1x66x114x4xbf16, #tpu.memory_space<vmem>>, vector<1x1x113x4xbf16>
      %15 = vector.shape_cast %14 : vector<1x1x113x4xbf16> to vector<113x4xbf16>
      %c8 = arith.constant 8 : index
      %c0_13 = arith.constant 0 : index
      %16 = vector.load %arg2[%c8, %c0_13] : memref<16x128xbf16, #tpu.memory_space<vmem>>, vector<4x128xbf16>
      %cst_14 = arith.constant dense<0.000000e+00> : vector<113x128xf32>
      %17 = tpu.matmul %15, %16, %cst_14 {dimension_numbers = #tpu.dot_dimension_numbers<[1], [0], [0], [1], [0, 0, 1, 1], [], []>} : vector<113x4xbf16>, vector<4x128xbf16>, vector<113x128xf32> -> vector<113x128xf32>
      %18 = arith.addf %11, %17 : vector<113x128xf32>
      %c1_i32_15 = arith.constant 1 : i32
      %19 = arith.addi %arg4, %c1_i32_15 : i32
      %c0_16 = arith.constant 0 : index
      %20 = arith.index_cast %19 : i32 to index
      %c1_17 = arith.constant 1 : index
      %c0_18 = arith.constant 0 : index
      %21 = vector.load %arg1[%c0_16, %20, %c1_17, %c0_18] : memref<1x66x114x4xbf16, #tpu.memory_space<vmem>>, vector<1x1x113x4xbf16>
      %22 = vector.shape_cast %21 : vector<1x1x113x4xbf16> to vector<113x4xbf16>
      %c12 = arith.constant 12 : index
      %c0_19 = arith.constant 0 : index
      %23 = vector.load %arg2[%c12, %c0_19] : memref<16x128xbf16, #tpu.memory_space<vmem>>, vector<4x128xbf16>
      %cst_20 = arith.constant dense<0.000000e+00> : vector<113x128xf32>
      %24 = tpu.matmul %22, %23, %cst_20 {dimension_numbers = #tpu.dot_dimension_numbers<[1], [0], [0], [1], [0, 0, 1, 1], [], []>} : vector<113x4xbf16>, vector<4x128xbf16>, vector<113x128xf32> -> vector<113x128xf32>
      %25 = arith.addf %18, %24 : vector<113x128xf32>
      %26 = math.tanh %25 : vector<113x128xf32>
      %c0_21 = arith.constant 0 : index
      %27 = arith.index_cast %arg4 : i32 to index
      %c0_22 = arith.constant 0 : index
      %c0_23 = arith.constant 0 : index
      %28 = vector.load %arg3[%c0_21, %27, %c0_22, %c0_23] : memref<1x65x113x128xf32, #tpu.memory_space<vmem>>, vector<1x1x113x128xf32>
      %29 = vector.shape_cast %28 : vector<1x1x113x128xf32> to vector<113x128xf32>
      %30 = vector.shape_cast %26 : vector<113x128xf32> to vector<1x1x113x128xf32>
      tpu.vector_store %arg3[%c0_21, %27, %c0_22, %c0_23], %30 {strides = array<i32>} : memref<1x65x113x128xf32, #tpu.memory_space<vmem>>, vector<1x1x113x128xf32>,
    }
    %c65_i32_0 = arith.constant 65 : i32
    return
  }
  func.func @transform_0(%arg0: i32) -> (i32, i32, i32, i32) {
    %c0_i32 = arith.constant 0 : i32
    %c0_i32_0 = arith.constant 0 : i32
    %c0_i32_1 = arith.constant 0 : i32
    %c0_i32_2 = arith.constant 0 : i32
    return %arg0, %c0_i32, %c0_i32_0, %c0_i32_1 : i32, i32, i32, i32
  }
  func.func @transform_1(%arg0: i32) -> (i32, i32) {
    %c0_i32 = arith.constant 0 : i32
    %c0_i32_0 = arith.constant 0 : i32
    %c0_i32_1 = arith.constant 0 : i32
    return %c0_i32, %c0_i32_0 : i32, i32
  }
  func.func @transform_2(%arg0: i32) -> (i32, i32, i32, i32) {
    %c0_i32 = arith.constant 0 : i32
    %c0_i32_0 = arith.constant 0 : i32
    %c0_i32_1 = arith.constant 0 : i32
    %c0_i32_2 = arith.constant 0 : i32
    return %arg0, %c0_i32, %c0_i32_0, %c0_i32_1 : i32, i32, i32, i32
  }
}

</mosaic_0001>

<bundles_post_ra>
// kernel: squeeze.41
= control target key start
LH: loop header
LB: loop body
LE: loop exit
PB: predicated region body
PF: predicated region fallthrough
CT: control target
= control target key end

     0   :  { %vm7_vm0 = vcmask 130048   ;;  %s43_s8 = smov 80   ;;  %s44_s9 = smov 96   ;;  %s68_s0 = inlined_call_operand.vmem [shape: f32[64], index: 0, kind: input, shape index: {}]   ;;  %s69_s1 = inlined_call_operand.vmem [shape: f32[2,2,16], index: 1, kind: output, shape index: {}]  }
   0x1   :  { %v4_v0 = vld [vmem:[%s68_s0] sm:$0x1]  ;;  %s42_s0 = smov 112  }
   0x2   :  { %5 = vst [vmem:[#allocation1] sm:$0x1] %v4_v0 }
   0x9   :  { %v9_v1 = vld [vmem:[#allocation1] sm:$0x1]  }
   0xa   :  { %v21_v2 = vld [vmem:[#allocation1] sm:$0x1]   ;;  %10 = vrot.lane.b32.xlu0 %v9_v1, %s42_s0 }
   0xb   :  { %22 = vrot.lane.b32.xlu1 %v21_v2, %s43_s8  ;;  %v6_v3 = vld [vmem:[#allocation1] sm:$0x1]  }
   0xc   :  { %v15_v4 = vld [vmem:[#allocation1] sm:$0x1]   ;;  %8 = vst.msk [vmem:[#allocation0] sm:$0x1] %vm7_vm0, %v6_v3  }
   0xe   :  { %16 = vrot.lane.b32.xlu0 %v15_v4, %s44_s9 }
  0x7c   :  { %v11_v5 = vpop.permute.xlu0 %10  }
  0x7d   :  { %v23_v6 = vpop.permute.xlu1 %22   ;;  %14 = vst.msk [vmem:[#allocation0 + $0x1] sm:$0x1] %vm7_vm0, %v11_v5  }
  0x7e   :  { %26 = vst.msk [vmem:[#allocation0 + $0x9] sm:$0x1] %vm7_vm0, %v23_v6  }
  0x80   :  { %v17_v7 = vpop.permute.xlu0 %16  }
  0x81   :  { %20 = vst.msk [vmem:[#allocation0 + $0x8] sm:$0x1] %vm7_vm0, %v17_v7  }
  0x84   :  { %v30_v8 = vld [vmem:[#allocation0] sm:$0x3] }
  0x85   :  { %32 = vst [vmem:[%s69_s1] sm:$0x3] %v30_v8 }
  0x88   :  { %v34_v9 = vld [vmem:[#allocation0 + $0x8] sm:$0x3] }
  0x89   :  { %38 = vst [vmem:[%s69_s1 + $0x2] sm:$0x3] %v34_v9 }

// kernel: squeeze.51
= control target key start
LH: loop header
LB: loop body
LE: loop exit
PB: predicated region body
PF: predicated region fallthrough
CT: control target
= control target key end

     0   :  { %vm7_vm0 = vcmask 64512   ;;  %s43_s8 = smov 104   ;;  %s44_s9 = smov 112   ;;  %s68_s0 = inlined_call_operand.vmem [shape: f32[32], index: 0, kind: input, shape index: {}]   ;;  %s69_s1 = inlined_call_operand.vmem [shape: f32[2,2,8], index: 1, kind: output, shape index: {}]  }
   0x1   :  { %v4_v0 = vld [vmem:[%s68_s0] sm:$0x1]  ;;  %s42_s0 = smov 120  }
   0x2   :  { %5 = vst [vmem:[#allocation1] sm:$0x1] %v4_v0 }
   0x9   :  { %v9_v1 = vld [vmem:[#allocation1] sm:$0x1]  }
   0xa   :  { %v21_v2 = vld [vmem:[#allocation1] sm:$0x1]   ;;  %10 = vrot.lane.b32.xlu0 %v9_v1, %s42_s0 }
   0xb   :  { %22 = vrot.lane.b32.xlu1 %v21_v2, %s43_s8  ;;  %v6_v3 = vld [vmem:[#allocation1] sm:$0x1]  }
   0xc   :  { %v15_v4 = vld [vmem:[#allocation1] sm:$0x1]   ;;  %8 = vst.msk [vmem:[#allocation0] sm:$0x1] %vm7_vm0, %v6_v3  }
   0xe   :  { %16 = vrot.lane.b32.xlu0 %v15_v4, %s44_s9 }
  0x7c   :  { %v11_v5 = vpop.permute.xlu0 %10  }
  0x7d   :  { %v23_v6 = vpop.permute.xlu1 %22   ;;  %14 = vst.msk [vmem:[#allocation0 + $0x1] sm:$0x1] %vm7_vm0, %v11_v5  }
  0x7e   :  { %26 = vst.msk [vmem:[#allocation0 + $0x9] sm:$0x1] %vm7_vm0, %v23_v6  }
  0x80   :  { %v17_v7 = vpop.permute.xlu0 %16  }
  0x81   :  { %20 = vst.msk [vmem:[#allocation0 + $0x8] sm:$0x1] %vm7_vm0, %v17_v7  }
  0x84   :  { %v30_v8 = vld [vmem:[#allocation0] sm:$0x3] }
  0x85   :  { %32 = vst [vmem:[%s69_s1] sm:$0x3] %v30_v8 }
  0x88   :  { %v34_v9 = vld [vmem:[#allocation0 + $0x8] sm:$0x3] }
  0x89   :  { %38 = vst [vmem:[%s69_s1 + $0x2] sm:$0x3] %v34_v9 }

// kernel: cars_cnn_generator.5
= control target key start
LH: loop header
LB: loop body
LE: loop exit
PB: predicated region body
PF: predicated region fallthrough
CT: control target
= control target key end

     0   :  { %9 = vsyncpa [#allocation3], 0  ;;  %s853_s12 = smov 0   ;;  %s956_s0 = inlined_call_operand.vmem [shape: bf16[2,6,9,32], index: 0, kind: input, shape index: {}]   ;;  %s957_s1 = inlined_call_operand.hbm [shape: bf16[128,128], index: 1, kind: input, shape index: {}]   ;;  %s958_s2 = inlined_call_operand.vmem [shape: bf16[2,5,8,128], index: 2, kind: output, shape index: {0}]   ;;  %s959_s3 = inlined_call_operand.vmem [shape: f32[2,2,128], index: 3, kind: output, shape index: {1}]  }
   0x1 LB: > { %s859_s13 = sadd.s32 4294967295, %s814_s12   ;;  %p620_p0 = scmp.ge.s32.totalorder %s814_s12, 1  ;;  %s814_s12 = sphi %s853_s12, %s15_s12  }
   0x2   : > { %p119_p1 = scmp.lt.s32.totalorder %s814_s12, 3  ;;  %s828_s14 = smov [#allocation2]  }
   0x3   : > { %s131_s15 = sshll.u32 %s828_s14, 4  ;;  %p960_p3 = scmp.eq.s32.totalorder %s859_s13, 0  ;;  %s132_s15 = int_to_ptr.vmem [resolvable:$true] %s131_s15 }
   0x4   : > { %p863_p2 = pnand %p620_p0, %p119_p1  ;;  %s764_s20 = scalar_lea.hbm %s957_s1, 1024 }
   0x5   : > { %p765_p6 = scmp.ne.s32.totalorder %s957_s1, %s764_s20  ;;  %p771_p10 = scmp.lt.u32.totalorder %s764_s20, %s957_s1 }
   0x6   : > { %s962_s16 = scalar_select %p863_p2, 1, 0 }
   0x7   : > { %p711_p4 = pneg %p863_p2 }
   0x9   : > { %p872_p5 = pnand %p960_p3, %p711_p4 }
   0xb   : > { %p766_p7 = pneg %p872_p5 }
   0xd   : > { %p767_p8 = pnand %p766_p7, %p765_p6 }
   0xf   : > { %p768_p9 = pneg %p767_p8 }
  0x11   : > { %p773_p11 = pnand %p771_p10, %p768_p9 }
  0x13   : > { %776 = shalt.err (!%p773_p11)
}
  0x14   : > { %s777_s25 = scalar_lea.vmem %s132_s15, 1024  ;;  %p785_p1 = scmp.lt.s32.totalorder %s132_s15, %s132_s15 }
  0x15   : > { %p778_p12 = scmp.ne.s32.totalorder %s132_s15, %s777_s25  ;;  %p786_p4 = scmp.lt.s32.totalorder %s777_s25, %s777_s25 }
  0x17   : > { %p780_p13 = pnand %p778_p12, %p766_p7  ;;  %p787_p3 = por %p786_p4, %p785_p1 }
  0x19   : > { %p781_p0 = pneg %p780_p13 }
  0x1b   : > { %p788_p2 = pnand %p787_p3, %p781_p0 }
  0x1d   : > { %791 = shalt.err (!%p788_p2)
}
  0x1e   : > { %s829_s26 = smov 64   ;;  %s830_s27 = smov 4  }
  0x1f   : > { %714 = dma.hbm_to_vmem [thread:$0]  (!%p872_p5), %s957_s1, 1024, %s132_s15, [#allocation3], %s829_s26, %s829_s26, %s830_s27  }
  0x20   : > { %p964_p6 = scmp.ne.s32.totalorder %s962_s16, 0 }
  0x21   : > { %p965_p8 = scmp.eq.s32.totalorder (!%p964_p6), %s859_s13, 0 }
  0x22   : > { %155 = sbr.rel (%p964_p6) target bundleno = 303 (0x12f), region = 28 }
  0x29   : > { %809 = dma.done.wait (%p965_p8), [#allocation3], 1024   ;;  %p966_p7 = pmov %p965_p8 }
  0x2a   : > { %p183_p2 = scmp.lt.s32.totalorder %s859_s13, 1  ;;  %v915_v0 = vmov 0.0   ;;  %v917_v1 = vmov 0.0  }
  0x2b   : > { %811 = vsyncadd (%p966_p7), [#allocation3], 4294966272 }
  0x2c   : > { %s970_s13 = smov (!%p183_p2, %s859_s13), 1 }
  0x2d   : > { %s705_s30 = smul.u32 48, %s970_s13  ;;  %s627_s4 = sshll.u32 %s970_s13, 1 }
  0x2e   : > { %s706_s5 = smul.u32 20, %s970_s13  ;;  %s903_s8 = scalar_lea.vmem %s959_s3, %s627_s4 }
  0x2f   : > { %s908_s11 = scalar_lea.vmem %s956_s0, %s705_s30  ;;  %s919_s13 = smov 0  }
  0x30   : > { %s913_s16 = scalar_lea.vmem %s958_s2, %s706_s5 }
  0x31 LB: >> { %v754_v2 = vld [vmem:[#allocation2 + $0x20] sm:$0xff]   ;;  %v831_v3 = vmov 0.0   ;;  %v755_v4 = vld [vmem:[#allocation2 + $0x10] sm:$0xff]   ;;  %v756_v5 = vld [vmem:[#allocation2 + $0x28] sm:$0xff]   ;;  %vm832_vm0 = vmmov 0   ;;  %s651_s17 = sshll.u32 %s826_s13, 3  ;;  %s826_s13 = sphi %s919_s13, %s203_s13   ;;  %v822_v1 = vphi %v917_v1, %v968_v1   ;;  %v818_v0 = vphi %v915_v0, %v967_v0  }
  0x32   : >> { %680 = vmatprep.subr.bf16.mxu0 %v831_v3  ;;  %664 = vmatprep.subr.bf16.mxu1 %v831_v3  ;;  %v757_v6 = vld [vmem:[#allocation2 + $0x18] sm:$0xff]   ;;  %s208_s18 = scalar_lea.vmem %s908_s11, %s651_s17  ;;  %vm243_vm1 = vcmask 261120   ;;  %v760_v11 = vld [vmem:[#allocation2 + $0x30] sm:$0xff]   ;;  %v759_v17 = vld [vmem:[#allocation2] sm:$0xff]   ;;  %s648_s19 = sshll.u32 %s826_s13, 2 }
  0x33   : >> { %681 = vmatpush3.bf16.msra.mxu0 %v754_v2  ;;  %684 = vmatprep.mubr.msk.bf16.mxu0 %vm832_vm0, %v831_v3  ;;  %v209_v7 = vld [vmem:[%s208_s18] sm:$0xf]  ;;  %v214_v8 = vld [vmem:[%s208_s18 + $0x4] sm:$0x1]  ;;  %v638_v9 = vld [vmem:[%s208_s18 + $0x8] sm:$0xf]  ;;  %s483_s20 = scalar_lea.vmem %s913_s16, %s648_s19 }
  0x34   : >> { %665 = vmatpush3.bf16.msra.mxu1 %v755_v4  ;;  %682 = vmatprep.subr.bf16.mxu0 %v831_v3  ;;  %v630_v10 = vcombine.low %v209_v7, %v214_v8  ;;  %v763_v14 = vld [vmem:[%s208_s18 + $0x8] sm:$0x1f]   ;;  %v762_v16 = vld [vmem:[#allocation2 + $0x38] sm:$0xff]   ;;  %v761_v22 = vld [vmem:[#allocation2 + $0x8] sm:$0xff]   ;;  %s203_s13 = sadd.s32 1, %s826_s13  }
  0x35   : >> { %666 = vmatprep.subr.bf16.mxu1 %v831_v3  ;;  %668 = vmatprep.mubr.msk.bf16.mxu1 %vm832_vm0, %v831_v3  ;;  %v421_v18 = vshll.u32 %v763_v14, 16  ;;  %v419_v20 = vshrl.u32 %v763_v14, 16  ;;  %p200_p3 = scmp.ge.s32.totalorder %s203_s13, 5  }
  0x36   : >> { %v225_v12 = vshrl.u32 %v630_v10, 16  ;;  %v227_v13 = vshll.u32 %v630_v10, 16 }
  0x37   : >> { %683 = vmatpush3.bf16.msra.mxu0 %v756_v5  ;;  %v423_v21 = vrot.slane %v421_v18, 1 }
  0x38   : >> { %667 = vmatpush3.bf16.msra.mxu1 %v757_v6  ;;  %688 = vmatprep.subr.bf16.mxu0 %v831_v3  ;;  %v229_v15 = vrot.slane %v227_v13, 1 }
  0x39   : >> { %672 = vmatprep.subr.bf16.mxu1 %v831_v3  ;;  %v424_v23 = vor.u32 %v423_v21, %v419_v20 }
  0x3a   : >> { %685 = vmatmul.mubr.msk.bf16.vlgmr.msra.gmra.mrb[0].mxu0 %vm243_vm1, %v638_v9  ;;  %v230_v19 = vor.u32 %v229_v15, %v225_v12 }
  0x3b   : >> { %689 = vmatpush3.bf16.msra.mxu0 %v760_v11  ;;  %692 = vmatprep.mubr.msk.bf16.mxu0 %vm832_vm0, %v831_v3 }
  0x3c   : >> { %690 = vmatprep.subr.bf16.mxu0 %v831_v3  ;;  %669 = vmatmul.mubr.msk.bf16.vlgmr.msra.gmra.mrb[0].mxu1 %vm243_vm1, %v230_v19 }
  0x3d   : >> { %673 = vmatpush3.bf16.msra.mxu1 %v759_v17  ;;  %676 = vmatprep.mubr.msk.bf16.mxu1 %vm832_vm0, %v831_v3 }
  0x3e   : >> { %674 = vmatprep.subr.bf16.mxu1 %v831_v3 }
  0x3f   : >> { %691 = vmatpush3.bf16.msra.mxu0 %v762_v16 }
  0x41   : >> { %675 = vmatpush3.bf16.msra.mxu1 %v761_v22 }
  0x46   : >> { %693 = vmatmul.mubr.msk.bf16.vlgmr.msra.gmra.mrb[0].mxu0 %vm243_vm1, %v424_v23 }
  0x48   : >> { %677 = vmatmul.mubr.msk.bf16.vlgmr.msra.gmra.mrb[0].mxu1 %vm243_vm1, %v209_v7 }
 0x119   : >> { %v474_v24 = vpop.f32.mrb[0].mxu0 }
 0x11a   : >> { %v694_v25 = vpop.f32.mrb[1].mxu0 }
 0x11b   : >> { %v477_v26 = vpop.f32.mrb[2].mxu0  ;;  %v336_v28 = vpop.f32.mrb[0].mxu1 }
 0x11c   : >> { %v695_v27 = vpop.f32.mrb[3].mxu0  ;;  %v696_v29 = vadd.f32 %v474_v24, %v336_v28  ;;  %v678_v30 = vpop.f32.mrb[1].mxu1 }
 0x11d   : >> { %v339_v31 = vpop.f32.mrb[2].mxu1 }
 0x11e   : >> { %v481_v32 = vpack.c.bf16 %v696_v29, %v696_v29  ;;  %v485_v33 = vrot.slane %v696_v29, 4  ;;  %v492_v34 = vmul.f32 %v696_v29, %v696_v29  ;;  %v679_v35 = vpop.f32.mrb[3].mxu1 }
 0x120   : >> { %484 = vst [vmem:[%s483_s20] sm:$0xf] %v481_v32  ;;  %v486_v36 = vadd.f32 %v696_v29, %v485_v33  ;;  %v493_v37 = vrot.slane %v492_v34, 4 }
 0x122   : >> { %v487_v38 = vrot.slane %v486_v36, 2  ;;  %v494_v39 = vadd.f32 %v493_v37, %v492_v34 }
 0x124   : >> { %v488_v40 = vadd.f32 %v487_v38, %v486_v36  ;;  %v495_v41 = vrot.slane %v494_v39, 2 }
 0x126   : >> { %v489_v42 = vrot.slane %v488_v40, 1  ;;  %v496_v43 = vadd.f32 %v495_v41, %v494_v39 }
 0x128   : >> { %v490_v44 = vadd.f32 %v489_v42, %v488_v40  ;;  %v497_v45 = vrot.slane %v496_v43, 1  ;;  %202 = sbr.rel (!%p200_p3) target bundleno = 49 (0x31), region = 85 }
 0x12a   : >> { %v491_v46 = vadd.f32 %v822_v1, %v490_v44   ;;  %v498_v47 = vadd.f32 %v497_v45, %v496_v43 }
 0x12c   : >> { %v499_v48 = vadd.f32 %v818_v0, %v498_v47   ;;  %v968_v1 = vmov %v491_v46  ;;  %500 = vst [vmem:[%s903_s8] sm:$0x1] (%p200_p3), %v491_v46 }
 0x12e   : >> { %v967_v0 = vmov %v499_v48  ;;  %501 = vst [vmem:[%s903_s8 + $0x1] sm:$0x1] (%p200_p3), %v499_v48 }
 0x12f PF: > { %s15_s12 = sadd.s32 1, %s814_s12  }
 0x130   : > { %p12_p5 = scmp.ge.s32.totalorder %s15_s12, 4  }
 0x132   :  { %14 = sbr.rel (!%p12_p5) target bundleno = 1 (0x1), region = 96 }
 0x139   :  { %537 = vsyncpa [#allocation3], 1 }
 0x13a   :  { %539 = vsyncpa [#allocation3 + $0x1], 1 }

// kernel: cars_cnn_generator.6
= control target key start
LH: loop header
LB: loop body
LE: loop exit
PB: predicated region body
PF: predicated region fallthrough
CT: control target
= control target key end

     0   :  { %9 = vsyncpa [#allocation3], 0  ;;  %s828_s12 = smov 0   ;;  %s934_s0 = inlined_call_operand.vmem [shape: bf16[2,10,16,16], index: 0, kind: input, shape index: {}]   ;;  %s935_s1 = inlined_call_operand.hbm [shape: bf16[64,128], index: 1, kind: input, shape index: {}]   ;;  %s936_s2 = inlined_call_operand.vmem [shape: bf16[2,9,15,128], index: 2, kind: output, shape index: {0}]   ;;  %s937_s3 = inlined_call_operand.vmem [shape: f32[2,2,128], index: 3, kind: output, shape index: {1}]  }
   0x1 LB: > { %s834_s13 = sadd.s32 4294967295, %s789_s12   ;;  %p610_p0 = scmp.ge.s32.totalorder %s789_s12, 1  ;;  %s789_s12 = sphi %s828_s12, %s15_s12  }
   0x2   : > { %p119_p1 = scmp.lt.s32.totalorder %s789_s12, 3  ;;  %s803_s14 = smov [#allocation2]  }
   0x3   : > { %s131_s15 = sshll.u32 %s803_s14, 4  ;;  %p938_p3 = scmp.eq.s32.totalorder %s834_s13, 0  ;;  %s132_s15 = int_to_ptr.vmem [resolvable:$true] %s131_s15 }
   0x4   : > { %p838_p2 = pnand %p610_p0, %p119_p1  ;;  %s739_s20 = scalar_lea.hbm %s935_s1, 512 }
   0x5   : > { %p740_p6 = scmp.ne.s32.totalorder %s935_s1, %s739_s20  ;;  %p746_p10 = scmp.lt.u32.totalorder %s739_s20, %s935_s1 }
   0x6   : > { %s940_s16 = scalar_select %p838_p2, 1, 0 }
   0x7   : > { %p690_p4 = pneg %p838_p2 }
   0x9   : > { %p847_p5 = pnand %p938_p3, %p690_p4 }
   0xb   : > { %p741_p7 = pneg %p847_p5 }
   0xd   : > { %p742_p8 = pnand %p741_p7, %p740_p6 }
   0xf   : > { %p743_p9 = pneg %p742_p8 }
  0x11   : > { %p748_p11 = pnand %p746_p10, %p743_p9 }
  0x13   : > { %751 = shalt.err (!%p748_p11)
}
  0x14   : > { %s752_s25 = scalar_lea.vmem %s132_s15, 512  ;;  %p760_p1 = scmp.lt.s32.totalorder %s132_s15, %s132_s15 }
  0x15   : > { %p753_p12 = scmp.ne.s32.totalorder %s132_s15, %s752_s25  ;;  %p761_p4 = scmp.lt.s32.totalorder %s752_s25, %s752_s25 }
  0x17   : > { %p755_p13 = pnand %p753_p12, %p741_p7  ;;  %p762_p3 = por %p761_p4, %p760_p1 }
  0x19   : > { %p756_p0 = pneg %p755_p13 }
  0x1b   : > { %p763_p2 = pnand %p762_p3, %p756_p0 }
  0x1d   : > { %766 = shalt.err (!%p763_p2)
}
  0x1e   : > { %s804_s26 = smov 64   ;;  %s805_s27 = smov 4  }
  0x1f   : > { %693 = dma.hbm_to_vmem [thread:$0]  (!%p847_p5), %s935_s1, 512, %s132_s15, [#allocation3], %s804_s26, %s804_s26, %s805_s27  }
  0x20   : > { %p942_p6 = scmp.ne.s32.totalorder %s940_s16, 0 }
  0x21   : > { %p943_p8 = scmp.eq.s32.totalorder (!%p942_p6), %s834_s13, 0 }
  0x22   : > { %155 = sbr.rel (%p942_p6) target bundleno = 306 (0x132), region = 28 }
  0x29   : > { %784 = dma.done.wait (%p943_p8), [#allocation3], 512   ;;  %p944_p7 = pmov %p943_p8 }
  0x2a   : > { %p183_p2 = scmp.lt.s32.totalorder %s834_s13, 1  ;;  %v890_v0 = vmov 0.0   ;;  %v892_v1 = vmov 0.0  }
  0x2b   : > { %786 = vsyncadd (%p944_p7), [#allocation3], 4294966784 }
  0x2c   : > { %s948_s13 = smov (!%p183_p2, %s834_s13), 1 }
  0x2d   : > { %s684_s30 = smul.u32 80, %s948_s13  ;;  %s617_s4 = sshll.u32 %s948_s13, 1 }
  0x2e   : > { %s685_s5 = smul.u32 72, %s948_s13  ;;  %s878_s8 = scalar_lea.vmem %s937_s3, %s617_s4 }
  0x2f   : > { %s883_s11 = scalar_lea.vmem %s934_s0, %s684_s30  ;;  %s894_s13 = smov 0  }
  0x30   : > { %s888_s16 = scalar_lea.vmem %s936_s2, %s685_s5 }
  0x31 LB: >> { %v733_v2 = vld [vmem:[#allocation2 + $0x10] sm:$0xff]   ;;  %v806_v3 = vmov 0.0   ;;  %vm807_vm0 = vmmov 0   ;;  %s638_s17 = sshll.u32 %s801_s13, 3  ;;  %v735_v4 = vld [vmem:[#allocation2 + $0x8] sm:$0xff]   ;;  %vm233_vm1 = vcmask 130048   ;;  %s801_s13 = sphi %s894_s13, %s203_s13   ;;  %v797_v1 = vphi %v892_v1, %v946_v1   ;;  %v793_v0 = vphi %v890_v0, %v945_v0  }
  0x32   : >> { %662 = vmatprep.subr.bf16.mxu0 %v806_v3  ;;  %650 = vmatprep.subr.bf16.mxu1 %v806_v3  ;;  %s208_s18 = scalar_lea.vmem %s883_s11, %s638_s17  ;;  %v738_v8 = vld [vmem:[#allocation2 + $0x18] sm:$0xff]   ;;  %v737_v14 = vld [vmem:[#allocation2] sm:$0xff]   ;;  %s461_s19 = scalar_lea.vmem %s888_s16, %s638_s17  ;;  %vm463_vm2 = vcmask 1043456   ;;  %vm464_vm3 = vsmask.f32 3328  ;;  %vm469_vm4 = vcmask 1046528  }
  0x33   : >> { %663 = vmatpush3.bf16.msra.mxu0 %v733_v2  ;;  %664 = vmatprep.mubr.msk.bf16.mxu0 %vm807_vm0, %v806_v3  ;;  %v734_v5 = vld [vmem:[%s208_s18 + $0x8] sm:$0xff]   ;;  %v736_v6 = vld [vmem:[%s208_s18] sm:$0xff]   ;;  %vm465_vm5 = vmand %vm463_vm2, %vm464_vm3  ;;  %s203_s13 = sadd.s32 1, %s801_s13  }
  0x34   : >> { %652 = vmatprep.mubr.msk.bf16.mxu1 %vm807_vm0, %v806_v3  ;;  %668 = vmatprep.subr.bf16.mxu0 %v806_v3  ;;  %v396_v7 = vshll.u32 %v734_v5, 16  ;;  %v221_v9 = vshrl.u32 %v736_v6, 16  ;;  %v223_v10 = vshll.u32 %v736_v6, 16  ;;  %v394_v12 = vshrl.u32 %v734_v5, 16  ;;  %v466_v28 = vld [vmem:[%s461_s19 + $0x4] sm:$0xf] }
  0x35   : >> { %651 = vmatpush3.bf16.msra.mxu1 %v735_v4  ;;  %p200_p3 = scmp.ge.s32.totalorder %s203_s13, 9  }
  0x36   : >> { %656 = vmatprep.subr.bf16.mxu1 %v806_v3  ;;  %665 = vmatmul.mubr.msk.bf16.vlgmr.msra.gmra.mrb[0].mxu0 %vm233_vm1, %v734_v5  ;;  %v225_v11 = vrot.slane %v223_v10, 1  ;;  %v398_v13 = vrot.slane %v396_v7, 1 }
  0x37   : >> { %670 = vmatprep.mubr.msk.bf16.mxu0 %vm807_vm0, %v806_v3  ;;  %669 = vmatpush3.bf16.msra.mxu0 %v738_v8 }
  0x38   : >> { %v226_v15 = vor.u32 %v225_v11, %v221_v9  ;;  %v399_v16 = vor.u32 %v398_v13, %v394_v12 }
  0x3a   : >> { %653 = vmatmul.mubr.msk.bf16.vlgmr.msra.gmra.mrb[0].mxu1 %vm233_vm1, %v226_v15 }
  0x3b   : >> { %657 = vmatpush3.bf16.msra.mxu1 %v737_v14  ;;  %658 = vmatprep.mubr.msk.bf16.mxu1 %vm807_vm0, %v806_v3 }
  0x42   : >> { %671 = vmatmul.mubr.msk.bf16.vlgmr.msra.gmra.mrb[0].mxu0 %vm233_vm1, %v399_v16 }
  0x46   : >> { %659 = vmatmul.mubr.msk.bf16.vlgmr.msra.gmra.mrb[0].mxu1 %vm233_vm1, %v736_v6 }
 0x115   : >> { %v443_v17 = vpop.f32.mrb[0].mxu0 }
 0x116   : >> { %v672_v18 = vpop.f32.mrb[1].mxu0 }
 0x117   : >> { %v446_v19 = vpop.f32.mrb[2].mxu0 }
 0x118   : >> { %v673_v20 = vpop.f32.mrb[3].mxu0 }
 0x119   : >> { %v320_v21 = vpop.f32.mrb[0].mxu1 }
 0x11a   : >> { %v674_v22 = vadd.f32 %v443_v17, %v320_v21  ;;  %v660_v23 = vpop.f32.mrb[1].mxu1 }
 0x11b   : >> { %v323_v24 = vpop.f32.mrb[2].mxu1 }
 0x11c   : >> { %v639_v25 = vpack.c.bf16 %v674_v22, %v674_v22  ;;  %v675_v26 = vadd.f32 %v446_v19, %v323_v24  ;;  %v661_v27 = vpop.f32.mrb[3].mxu1  ;;  %v479_v32 = vmul.f32 %v674_v22, %v674_v22 }
 0x11e   : >> { %462 = vst [vmem:[%s461_s19] sm:$0xf] %v639_v25  ;;  %v640_v29 = vpack.c.bf16 %v675_v26, %v675_v26  ;;  %v470_v30 = vsel %vm469_vm4, %v675_v26, 0.0  ;;  %v480_v31 = vmul.f32 %v675_v26, %v675_v26 }
 0x11f   : >> { %v471_v33 = vadd.f32 %v674_v22, %v470_v30 }
 0x120   : >> { %v467_v34 = vsel %vm465_vm5, %v640_v29, %v466_v28  ;;  %v481_v35 = vsel %vm469_vm4, %v480_v31, 0.0 }
 0x121   : >> { %468 = vst [vmem:[%s461_s19 + $0x4] sm:$0xf] %v467_v34  ;;  %v472_v36 = vrot.slane %v471_v33, 4  ;;  %v482_v37 = vadd.f32 %v481_v35, %v479_v32 }
 0x123   : >> { %v473_v38 = vadd.f32 %v472_v36, %v471_v33  ;;  %v483_v39 = vrot.slane %v482_v37, 4 }
 0x125   : >> { %v474_v40 = vrot.slane %v473_v38, 2  ;;  %v484_v41 = vadd.f32 %v483_v39, %v482_v37 }
 0x127   : >> { %v475_v42 = vadd.f32 %v474_v40, %v473_v38  ;;  %v485_v43 = vrot.slane %v484_v41, 2 }
 0x129   : >> { %v476_v44 = vrot.slane %v475_v42, 1  ;;  %v486_v45 = vadd.f32 %v485_v43, %v484_v41 }
 0x12b   : >> { %v477_v46 = vadd.f32 %v476_v44, %v475_v42  ;;  %v487_v47 = vrot.slane %v486_v45, 1  ;;  %202 = sbr.rel (!%p200_p3) target bundleno = 49 (0x31), region = 85 }
 0x12d   : >> { %v478_v48 = vadd.f32 %v797_v1, %v477_v46   ;;  %v488_v49 = vadd.f32 %v487_v47, %v486_v45 }
 0x12f   : >> { %v489_v50 = vadd.f32 %v793_v0, %v488_v49   ;;  %v946_v1 = vmov %v478_v48  ;;  %490 = vst [vmem:[%s878_s8] sm:$0x1] (%p200_p3), %v478_v48 }
 0x131   : >> { %v945_v0 = vmov %v489_v50  ;;  %491 = vst [vmem:[%s878_s8 + $0x1] sm:$0x1] (%p200_p3), %v489_v50 }
 0x132 PF: > { %s15_s12 = sadd.s32 1, %s789_s12  }
 0x133   : > { %p12_p5 = scmp.ge.s32.totalorder %s15_s12, 4  }
 0x135   :  { %14 = sbr.rel (!%p12_p5) target bundleno = 1 (0x1), region = 96 }
 0x13c   :  { %527 = vsyncpa [#allocation3], 1 }
 0x13d   :  { %529 = vsyncpa [#allocation3 + $0x1], 1 }

// kernel: squeeze.61
= control target key start
LH: loop header
LB: loop body
LE: loop exit
PB: predicated region body
PF: predicated region fallthrough
CT: control target
= control target key end

     0   :  { %vm7_vm0 = vcmask 31744   ;;  %s43_s8 = smov 116   ;;  %s44_s9 = smov 120   ;;  %s68_s0 = inlined_call_operand.vmem [shape: f32[16], index: 0, kind: input, shape index: {}]   ;;  %s69_s1 = inlined_call_operand.vmem [shape: f32[2,2,4], index: 1, kind: output, shape index: {}]  }
   0x1   :  { %v4_v0 = vld [vmem:[%s68_s0] sm:$0x1]  ;;  %s42_s0 = smov 124  }
   0x2   :  { %5 = vst [vmem:[#allocation1] sm:$0x1] %v4_v0 }
   0x9   :  { %v9_v1 = vld [vmem:[#allocation1] sm:$0x1]  }
   0xa   :  { %v21_v2 = vld [vmem:[#allocation1] sm:$0x1]   ;;  %10 = vrot.lane.b32.xlu0 %v9_v1, %s42_s0 }
   0xb   :  { %22 = vrot.lane.b32.xlu1 %v21_v2, %s43_s8  ;;  %v6_v3 = vld [vmem:[#allocation1] sm:$0x1]  }
   0xc   :  { %v15_v4 = vld [vmem:[#allocation1] sm:$0x1]   ;;  %8 = vst.msk [vmem:[#allocation0] sm:$0x1] %vm7_vm0, %v6_v3  }
   0xe   :  { %16 = vrot.lane.b32.xlu0 %v15_v4, %s44_s9 }
  0x7c   :  { %v11_v5 = vpop.permute.xlu0 %10  }
  0x7d   :  { %v23_v6 = vpop.permute.xlu1 %22   ;;  %14 = vst.msk [vmem:[#allocation0 + $0x1] sm:$0x1] %vm7_vm0, %v11_v5  }
  0x7e   :  { %26 = vst.msk [vmem:[#allocation0 + $0x9] sm:$0x1] %vm7_vm0, %v23_v6  }
  0x80   :  { %v17_v7 = vpop.permute.xlu0 %16  }
  0x81   :  { %20 = vst.msk [vmem:[#allocation0 + $0x8] sm:$0x1] %vm7_vm0, %v17_v7  }
  0x84   :  { %v30_v8 = vld [vmem:[#allocation0] sm:$0x3] }
  0x85   :  { %32 = vst [vmem:[%s69_s1] sm:$0x3] %v30_v8 }
  0x88   :  { %v34_v9 = vld [vmem:[#allocation0 + $0x8] sm:$0x3] }
  0x89   :  { %38 = vst [vmem:[%s69_s1 + $0x2] sm:$0x3] %v34_v9 }

// kernel: cars_cnn_generator.7
= control target key start
LH: loop header
LB: loop body
LE: loop exit
PB: predicated region body
PF: predicated region fallthrough
CT: control target
= control target key end

     0   :  { %s846_s12 = smov 0   ;;  %s933_s0 = inlined_call_operand.vmem [shape: bf16[2,18,30,8], index: 0, kind: input, shape index: {}]   ;;  %s934_s1 = inlined_call_operand.vmem [shape: bf16[32,128], index: 1, kind: input, shape index: {}]   ;;  %s935_s2 = inlined_call_operand.vmem [shape: bf16[2,17,29,128], index: 2, kind: output, shape index: {0}]   ;;  %s936_s3 = inlined_call_operand.vmem [shape: f32[2,2,128], index: 3, kind: output, shape index: {1}]  }
   0x1 LB: > { %s659_s13 = sadd.s32 4294967295, %s812_s12   ;;  %p663_p0 = scmp.ge.s32.totalorder %s812_s12, 1  ;;  %s812_s12 = sphi %s846_s12, %s14_s12  }
   0x2   : > { %p140_p1 = scmp.lt.s32.totalorder %s812_s12, 3 }
   0x4   : > { %p141_p2 = pnand %p663_p0, %p140_p1 }
   0x5   : > { %p168_p3 = scmp.lt.s32.totalorder (!%p141_p2), %s659_s13, 1  ;;  %v869_v0 = vmov (!%p141_p2), 0.0   ;;  %v871_v1 = vmov (!%p141_p2), 0.0   ;;  %s873_s26 = smov (!%p141_p2), 0  }
   0x6   : > { %144 = sbr.rel (%p141_p2) target bundleno = 282 (0x11a), region = 28 }
   0xd   : > { %s940_s13 = smov (!%p168_p3, %s659_s13), 1 }
   0xe   : > { %s756_s14 = smul.u32 288, %s940_s13  ;;  %s666_s15 = sshll.u32 %s940_s13, 1 }
   0xf   : > { %s757_s16 = smul.u32 272, %s940_s13  ;;  %s857_s19 = scalar_lea.vmem %s936_s3, %s666_s15 }
  0x10   : > { %s862_s22 = scalar_lea.vmem %s933_s0, %s756_s14 }
  0x11   : > { %s867_s25 = scalar_lea.vmem %s935_s2, %s757_s16 }
  0x12 LB: >> { %vm233_vm0 = vcmask 1043456   ;;  %v350_v2 = vld [vmem:[%s934_s1 + $0x8] sm:$0xf]  ;;  %v199_v3 = vld [vmem:[%s934_s1 + $0x4] sm:$0xf]  ;;  %s693_s6 = sshll.u32 %s824_s26, 4  ;;  %s824_s26 = sphi %s873_s26, %s188_s26   ;;  %v820_v1 = vphi %v871_v1, %v938_v1   ;;  %v816_v0 = vphi %v869_v0, %v937_v0  }
  0x13   : >> { %754 = vmatprep.subr.msk.bf16.mxu0 %vm233_vm0, %v350_v2  ;;  %v368_v4 = vsel %vm233_vm0, %v350_v2, 0  ;;  %752 = vmatprep.subr.msk.bf16.mxu1 %vm233_vm0, %v199_v3  ;;  %v235_v5 = vsel %vm233_vm0, %v199_v3, 0  ;;  %v198_v6 = vld [vmem:[%s934_s1] sm:$0xf]  ;;  %v423_v7 = vld [vmem:[%s934_s1 + $0xc] sm:$0xf]  ;;  %s193_s9 = scalar_lea.vmem %s862_s22, %s693_s6  ;;  %s516_s10 = scalar_lea.vmem %s867_s25, %s693_s6 }
  0x14   : >> { %729 = vmatpush3.bf16.msra.mxu0 %v368_v4  ;;  %717 = vmatpush3.bf16.msra.mxu1 %v235_v5  ;;  %vm226_vm1 = vcmask 64512   ;;  %v790_v8 = vld [vmem:[%s193_s9 + $0x10] sm:$0xff]   ;;  %v444_v9 = vsel %vm233_vm0, %v423_v7, 0  ;;  %v791_v10 = vld [vmem:[%s193_s9 + $0x18] sm:$0x7f]   ;;  %v792_v13 = vld [vmem:[%s193_s9] sm:$0xff]  }
  0x15   : >> { %753 = vmatprep.subr.msk.bf16.mxu1 %vm233_vm0, %v198_v6  ;;  %755 = vmatprep.subr.msk.bf16.mxu0 %vm233_vm0, %v423_v7  ;;  %v424_v11 = vshrl.u32 %v790_v8, 16  ;;  %v426_v12 = vshll.u32 %v790_v8, 16  ;;  %v430_v14 = vshll.u32 %v791_v10, 16  ;;  %v793_v16 = vld [vmem:[%s193_s9 + $0x8] sm:$0x7f]   ;;  %v212_v17 = vshrl.u32 %v792_v13, 16 }
  0x16   : >> { %730 = vmatprep.mubr.msk.bf16.mxu0 %vm226_vm1, %v790_v8  ;;  %v214_v18 = vshll.u32 %v792_v13, 16  ;;  %v219_v20 = vshll.u32 %v793_v16, 16  ;;  %v223_v21 = vshrl.u32 %v793_v16, 16  ;;  %vm210_vm2 = vsmask.f32 7424  ;;  %s188_s26 = sadd.s32 1, %s824_s26  }
  0x17   : >> { %731 = vmatmul.mubr.msk.bf16.vlgmr.msra.gmra.mrb[0].mxu0 %vm226_vm1, %v791_v10  ;;  %v428_v15 = vrot.slane %v426_v12, 1  ;;  %v432_v19 = vrot.slane %v430_v14, 1  ;;  %v434_v24 = vshrl.u32 %v791_v10, 16  ;;  %v291_v30 = vsel %vm233_vm0, %v198_v6, 0  ;;  %v523_v44 = vld [vmem:[%s516_s10 + $0xc] sm:$0x7] }
  0x18   : >> { %735 = vmatpush3.bf16.msra.mxu0 %v444_v9  ;;  %v216_v23 = vrot.slane %v214_v18, 1  ;;  %v221_v25 = vrot.slane %v219_v20, 1  ;;  %vm520_vm3 = vcmask 1042432   ;;  %vm521_vm4 = vsmask.f32 2304  ;;  %p185_p4 = scmp.ge.s32.totalorder %s188_s26, 17  }
  0x19   : >> { %v429_v22 = vor.u32 %v428_v15, %v424_v11  ;;  %v436_v31 = vor.u32 %v434_v24, %v432_v19  ;;  %vm522_vm5 = vmand %vm520_vm3, %vm521_vm4  ;;  %vm528_vm6 = vcmask 1044480  }
  0x1a   : >> { %v217_v27 = vor.u32 %v216_v23, %v212_v17  ;;  %v225_v28 = vor.u32 %v223_v21, %v221_v25 }
  0x1b   : >> { %v433_v26 = vsel %vm210_vm2, %v429_v22, %v432_v19 }
  0x1c   : >> { %736 = vmatprep.mubr.msk.bf16.mxu0 %vm226_vm1, %v433_v26  ;;  %v222_v29 = vsel %vm210_vm2, %v217_v27, %v221_v25 }
  0x1d   : >> { %718 = vmatprep.mubr.msk.bf16.mxu1 %vm226_vm1, %v222_v29 }
  0x1e   : >> { %719 = vmatmul.mubr.msk.bf16.vlgmr.msra.gmra.mrb[0].mxu1 %vm226_vm1, %v225_v28 }
  0x1f   : >> { %723 = vmatpush3.bf16.msra.mxu1 %v291_v30  ;;  %724 = vmatprep.mubr.msk.bf16.mxu1 %vm226_vm1, %v792_v13 }
  0x23   : >> { %737 = vmatmul.mubr.msk.bf16.vlgmr.msra.gmra.mrb[0].mxu0 %vm226_vm1, %v436_v31 }
  0x2a   : >> { %725 = vmatmul.mubr.msk.bf16.vlgmr.msra.gmra.mrb[0].mxu1 %vm226_vm1, %v793_v16 }
  0xf6   : >> { %v738_v32 = vpop.f32.mrb[0].mxu0 }
  0xf7   : >> { %v480_v33 = vpop.f32.mrb[1].mxu0 }
  0xf8   : >> { %v739_v34 = vpop.f32.mrb[2].mxu0 }
  0xf9   : >> { %v483_v35 = vpop.f32.mrb[3].mxu0 }
  0xfd   : >> { %v726_v36 = vpop.f32.mrb[0].mxu1 }
  0xfe   : >> { %v740_v37 = vadd.f32 %v738_v32, %v726_v36  ;;  %v327_v38 = vpop.f32.mrb[1].mxu1 }
  0xff   : >> { %v741_v39 = vadd.f32 %v480_v33, %v327_v38  ;;  %v727_v40 = vpop.f32.mrb[2].mxu1 }
 0x100   : >> { %v696_v41 = vpack.c.bf16 %v740_v37, %v740_v37  ;;  %v742_v42 = vadd.f32 %v739_v34, %v727_v40  ;;  %v330_v43 = vpop.f32.mrb[3].mxu1  ;;  %v540_v53 = vmul.f32 %v740_v37, %v740_v37 }
 0x101   : >> { %v743_v45 = vadd.f32 %v483_v35, %v330_v43  ;;  %v538_v47 = vmul.f32 %v741_v39, %v741_v39 }
 0x102   : >> { %519 = vst [vmem:[%s516_s10 + $0x8] sm:$0xf] %v696_v41  ;;  %v697_v46 = vpack.c.bf16 %v742_v42, %v742_v42  ;;  %v541_v52 = vmul.f32 %v742_v42, %v742_v42  ;;  %v529_v56 = vsel %vm528_vm6, %v742_v42, 0.0 }
 0x103   : >> { %v702_v48 = vpack.c.bf16 %v743_v45, %v741_v39  ;;  %v526_v49 = vadd.f32 %v743_v45, %v741_v39  ;;  %v539_v50 = vmul.f32 %v743_v45, %v743_v45 }
 0x104   : >> { %v524_v51 = vsel %vm522_vm5, %v697_v46, %v523_v44  ;;  %v544_v59 = vsel %vm528_vm6, %v541_v52, 0.0 }
 0x105   : >> { %525 = vst [vmem:[%s516_s10 + $0xc] sm:$0x7] %v524_v51  ;;  %703 = vst [vmem:[%s516_s10] sm:$0xff] %v702_v48   ;;  %v527_v54 = vadd.f32 %v740_v37, %v526_v49  ;;  %v542_v55 = vadd.f32 %v539_v50, %v538_v47 }
 0x107   : >> { %v530_v57 = vadd.f32 %v529_v56, %v527_v54  ;;  %v543_v58 = vadd.f32 %v542_v55, %v540_v53 }
 0x109   : >> { %v531_v60 = vrot.slane %v530_v57, 4  ;;  %v545_v61 = vadd.f32 %v544_v59, %v543_v58 }
 0x10b   : >> { %v532_v62 = vadd.f32 %v531_v60, %v530_v57  ;;  %v546_v63 = vrot.slane %v545_v61, 4 }
 0x10d   : >> { %v533_v2 = vrot.slane %v532_v62, 2  ;;  %v547_v3 = vadd.f32 %v546_v63, %v545_v61 }
 0x10f   : >> { %v534_v4 = vadd.f32 %v533_v2, %v532_v62  ;;  %v548_v5 = vrot.slane %v547_v3, 2 }
 0x111   : >> { %v535_v6 = vrot.slane %v534_v4, 1  ;;  %v549_v7 = vadd.f32 %v548_v5, %v547_v3 }
 0x113   : >> { %v536_v8 = vadd.f32 %v535_v6, %v534_v4  ;;  %v550_v9 = vrot.slane %v549_v7, 1  ;;  %187 = sbr.rel (!%p185_p4) target bundleno = 18 (0x12), region = 80 }
 0x115   : >> { %v537_v10 = vadd.f32 %v820_v1, %v536_v8   ;;  %v551_v11 = vadd.f32 %v550_v9, %v549_v7 }
 0x117   : >> { %v552_v12 = vadd.f32 %v816_v0, %v551_v11   ;;  %v938_v1 = vmov %v537_v10  ;;  %553 = vst [vmem:[%s857_s19] sm:$0x1] (%p185_p4), %v537_v10 }
 0x119   : >> { %v937_v0 = vmov %v552_v12  ;;  %554 = vst [vmem:[%s857_s19 + $0x1] sm:$0x1] (%p185_p4), %v552_v12 }
 0x11a PF: > { %s14_s12 = sadd.s32 1, %s812_s12  }
 0x11b   : > { %p11_p5 = scmp.ge.s32.totalorder %s14_s12, 4  }
 0x11d   :  { %13 = sbr.rel (!%p11_p5) target bundleno = 1 (0x1), region = 91 }

// kernel: cars_cnn_generator.8
= control target key start
LH: loop header
LB: loop body
LE: loop exit
PB: predicated region body
PF: predicated region fallthrough
CT: control target
= control target key end

     0   :  { %s1118_s12 = smov 0   ;;  %s1240_s0 = inlined_call_operand.vmem [shape: bf16[2,34,58,4], index: 0, kind: input, shape index: {}]   ;;  %s1241_s1 = inlined_call_operand.vmem [shape: bf16[16,128], index: 1, kind: input, shape index: {}]   ;;  %s1242_s2 = inlined_call_operand.vmem [shape: bf16[2,33,57,128], index: 2, kind: output, shape index: {0}]   ;;  %s1243_s3 = inlined_call_operand.vmem [shape: f32[2,2,128], index: 3, kind: output, shape index: {1}]  }
   0x1 LB: > { %s851_s13 = sadd.s32 4294967295, %s1084_s12   ;;  %p855_p0 = scmp.ge.s32.totalorder %s1084_s12, 1  ;;  %s1084_s12 = sphi %s1118_s12, %s14_s12  }
   0x2   : > { %p140_p1 = scmp.lt.s32.totalorder %s1084_s12, 3 }
   0x4   : > { %p141_p2 = pnand %p855_p0, %p140_p1 }
   0x5   : > { %p168_p3 = scmp.lt.s32.totalorder (!%p141_p2), %s851_s13, 1  ;;  %v1141_v0 = vmov (!%p141_p2), 0.0   ;;  %v1143_v1 = vmov (!%p141_p2), 0.0   ;;  %s1145_s26 = smov (!%p141_p2), 0  }
   0x6   : > { %144 = sbr.rel (%p141_p2) target bundleno = 295 (0x127), region = 28 }
   0xd   : > { %s1247_s13 = smov (!%p168_p3, %s851_s13), 1 }
   0xe   : > { %s1022_s14 = smul.u32 1088, %s1247_s13  ;;  %s858_s15 = sshll.u32 %s1247_s13, 1 }
   0xf   : > { %s1023_s16 = smul.u32 1056, %s1247_s13  ;;  %s1129_s19 = scalar_lea.vmem %s1243_s3, %s858_s15 }
  0x10   : > { %s1134_s22 = scalar_lea.vmem %s1240_s0, %s1022_s14 }
  0x11   : > { %s1139_s25 = scalar_lea.vmem %s1242_s2, %s1023_s16 }
  0x12 LB: >> { %vm273_vm0 = vcmask 1041408   ;;  %v430_v2 = vld [vmem:[%s1241_s1 + $0x4] sm:$0x3]  ;;  %v1058_v4 = vld [vmem:[%s1241_s1] ss:$0 sps:$4 sm:$0xcc]   ;;  %s1096_s26 = sphi %s1145_s26, %s188_s26   ;;  %v1092_v1 = vphi %v1143_v1, %v1245_v1   ;;  %v1088_v0 = vphi %v1141_v0, %v1244_v0  }
  0x13   : >> { %1020 = vmatprep.subr.msk.bf16.mxu0 %vm273_vm0, %v430_v2  ;;  %v464_v3 = vsel %vm273_vm0, %v430_v2, 0  ;;  %s907_s4 = sshll.u32 %s1096_s26, 5  ;;  %vm260_vm1 = vcmask 31744   ;;  %v259_v5 = vrot.slane %v1058_v4, 2  ;;  %v202_v6 = vld [vmem:[%s1241_s1] sm:$0x3] }
  0x14   : >> { %975 = vmatpush3.bf16.msra.mxu0 %v464_v3  ;;  %s1168_s5 = scalar_lea.vmem %s1134_s22, %s907_s4  ;;  %v1061_v7 = vld [vmem:[%s1241_s1 + $0x4] ss:$0 sps:$4 sm:$0xcc]   ;;  %vm224_vm2 = vsmask.f32 7424  ;;  %v351_v40 = vsel %vm273_vm0, %v202_v6, 0  ;;  %s1215_s10 = scalar_lea.vmem %s1139_s25, %s907_s4 }
  0x15   : >> { %v1056_v8 = vld [vmem:[%s1168_s5 + $0x20] sm:$0xff]   ;;  %v1057_v9 = vld [vmem:[%s1168_s5 + $0x28] sm:$0xff]   ;;  %1018 = vmatprep.subr.msk.bf16.mxu1 %vm273_vm0, %v259_v5  ;;  %v275_v10 = vsel %vm273_vm0, %v259_v5, 0  ;;  %v570_v14 = vrot.slane %v1061_v7, 2  ;;  %v1062_v19 = vld [vmem:[%s1168_s5 + $0x10] sm:$0xff]   ;;  %vm700_vm3 = vcmask 1040384  }
  0x16   : >> { %976 = vmatprep.mubr.msk.bf16.mxu0 %vm260_vm1, %v1056_v8  ;;  %v540_v11 = vshrl.u32 %v1056_v8, 16  ;;  %v542_v12 = vshll.u32 %v1056_v8, 16  ;;  %955 = vmatpush3.bf16.msra.mxu1 %v275_v10  ;;  %v1059_v13 = vld [vmem:[%s1168_s5] sm:$0xff]   ;;  %v1060_v16 = vld [vmem:[%s1168_s5 + $0x8] sm:$0xff]   ;;  %v1063_v20 = vld [vmem:[%s1168_s5 + $0x30] sm:$0xff]   ;;  %v241_v25 = vshll.u32 %v1062_v19, 16 }
  0x17   : >> { %977 = vmatmul.mubr.msk.bf16.vlgmr.msra.gmra.mrb[0].mxu0 %vm260_vm1, %v1057_v9  ;;  %1019 = vmatprep.subr.msk.bf16.mxu1 %vm273_vm0, %v202_v6  ;;  %v226_v17 = vshrl.u32 %v1059_v13, 16  ;;  %v228_v18 = vshll.u32 %v1059_v13, 16  ;;  %v233_v21 = vshll.u32 %v1060_v16, 16  ;;  %v237_v22 = vshrl.u32 %v1060_v16, 16  ;;  %v1064_v29 = vld [vmem:[%s1168_s5 + $0x38] sm:$0x1f]  }
  0x18   : >> { %v544_v15 = vrot.slane %v542_v12, 1  ;;  %1021 = vmatprep.subr.msk.bf16.mxu0 %vm273_vm0, %v570_v14  ;;  %v584_v23 = vsel %vm273_vm0, %v570_v14, 0  ;;  %980 = vmatprep.mubr.msk.bf16.mxu0 %vm260_vm1, %v1063_v20  ;;  %v553_v26 = vshll.u32 %v1063_v20, 16  ;;  %v245_v27 = vshrl.u32 %v1062_v19, 16  ;;  %v1065_v35 = vld [vmem:[%s1168_s5 + $0x18] sm:$0x1f]  }
  0x19   : >> { %v230_v24 = vrot.slane %v228_v18, 1  ;;  %985 = vmatpush3.bf16.msra.mxu0 %v584_v23  ;;  %v235_v28 = vrot.slane %v233_v21, 1  ;;  %v546_v31 = vshll.u32 %v1057_v9, 16  ;;  %v243_v33 = vrot.slane %v241_v25, 1  ;;  %s188_s26 = sadd.s32 1, %s1096_s26  }
  0x1a   : >> { %v545_v30 = vor.u32 %v544_v15, %v540_v11  ;;  %v550_v37 = vshrl.u32 %v1057_v9, 16  ;;  %v557_v38 = vshrl.u32 %v1063_v20, 16  ;;  %v555_v41 = vrot.slane %v553_v26, 1  ;;  %p185_p4 = scmp.ge.s32.totalorder %s188_s26, 33  }
  0x1b   : >> { %v231_v32 = vor.u32 %v230_v24, %v226_v17  ;;  %v239_v34 = vor.u32 %v237_v22, %v235_v28  ;;  %v548_v36 = vrot.slane %v546_v31, 1  ;;  %v560_v42 = vshll.u32 %v1064_v29, 16 }
  0x1c   : >> { %v247_v44 = vor.u32 %v245_v27, %v243_v33  ;;  %v249_v45 = vshll.u32 %v1065_v35, 16  ;;  %v253_v47 = vshrl.u32 %v1065_v35, 16  ;;  %v559_v49 = vor.u32 %v557_v38, %v555_v41 }
  0x1d   : >> { %v236_v39 = vsel %vm224_vm2, %v231_v32, %v235_v28  ;;  %v244_v43 = vsel %vm224_vm2, %v239_v34, %v243_v33  ;;  %v549_v46 = vsel %vm224_vm2, %v545_v30, %v548_v36  ;;  %v552_v48 = vor.u32 %v550_v37, %v548_v36  ;;  %v703_v34 = vld [vmem:[%s1215_s10 + $0x1c] sm:$0x1] }
  0x1e   : >> { %956 = vmatprep.mubr.msk.bf16.mxu1 %vm260_vm1, %v236_v39  ;;  %v562_v50 = vrot.slane %v560_v42, 1  ;;  %v251_v51 = vrot.slane %v249_v45, 1  ;;  %v564_v56 = vshrl.u32 %v1064_v29, 16  ;;  %vm701_vm4 = vsmask.f32 256 }
  0x1f   : >> { %981 = vmatmul.mubr.msk.bf16.gmra.mrb[4].mxu0 %vm260_vm1, %v1064_v29  ;;  %957 = vmatmul.mubr.msk.bf16.vlgmr.msra.gmra.mrb[0].mxu1 %vm260_vm1, %v244_v43  ;;  %v556_v53 = vsel %vm224_vm2, %v552_v48, %v555_v41  ;;  %vm702_vm5 = vmand %vm700_vm3, %vm701_vm4 }
  0x20   : >> { %986 = vmatprep.mubr.msk.bf16.mxu0 %vm260_vm1, %v549_v46  ;;  %965 = vmatpush3.bf16.msra.mxu1 %v351_v40  ;;  %v252_v52 = vsel %vm224_vm2, %v247_v44, %v251_v51  ;;  %v255_v54 = vor.u32 %v253_v47, %v251_v51  ;;  %v563_v55 = vsel %vm224_vm2, %v559_v49, %v562_v50 }
  0x21   : >> { %960 = vmatprep.mubr.msk.bf16.mxu1 %vm260_vm1, %v252_v52  ;;  %v566_v57 = vor.u32 %v564_v56, %v562_v50 }
  0x27   : >> { %987 = vmatmul.mubr.msk.bf16.vlgmr.msra.gmra.mrb[0].mxu0 %vm260_vm1, %v556_v53  ;;  %961 = vmatmul.mubr.msk.bf16.gmra.mrb[4].mxu1 %vm260_vm1, %v255_v54 }
  0x28   : >> { %990 = vmatprep.mubr.msk.bf16.mxu0 %vm260_vm1, %v563_v55  ;;  %966 = vmatprep.mubr.msk.bf16.mxu1 %vm260_vm1, %v1059_v13 }
  0x2f   : >> { %991 = vmatmul.mubr.msk.bf16.gmra.mrb[4].mxu0 %vm260_vm1, %v566_v57  ;;  %967 = vmatmul.mubr.msk.bf16.vlgmr.msra.gmra.mrb[0].mxu1 %vm260_vm1, %v1060_v16 }
  0x30   : >> { %970 = vmatprep.mubr.msk.bf16.mxu1 %vm260_vm1, %v1062_v19 }
  0x37   : >> { %971 = vmatmul.mubr.msk.bf16.gmra.mrb[4].mxu1 %vm260_vm1, %v1065_v35 }
  0xfa   : >> { %v988_v58 = vpop.f32.mrb[0].mxu0 }
  0xfb   : >> { %v620_v59 = vpop.f32.mrb[1].mxu0 }
  0xfc   : >> { %v989_v60 = vpop.f32.mrb[2].mxu0 }
  0xfd   : >> { %v623_v61 = vpop.f32.mrb[3].mxu0 }
 0x102   : >> { %v992_v62 = vpop.f32.mrb[4].mxu0  ;;  %v968_v2 = vpop.f32.mrb[0].mxu1 }
 0x103   : >> { %v636_v63 = vpop.f32.mrb[5].mxu0  ;;  %v994_v4 = vadd.f32 %v988_v58, %v968_v2  ;;  %v387_v5 = vpop.f32.mrb[1].mxu1 }
 0x104   : >> { %v993_v3 = vpop.f32.mrb[6].mxu0  ;;  %v995_v7 = vadd.f32 %v620_v59, %v387_v5  ;;  %v969_v8 = vpop.f32.mrb[2].mxu1 }
 0x105   : >> { %v639_v6 = vpop.f32.mrb[7].mxu0  ;;  %v996_v9 = vadd.f32 %v989_v60, %v969_v8  ;;  %v390_v10 = vpop.f32.mrb[3].mxu1  ;;  %v724_v17 = vmul.f32 %v994_v4, %v994_v4 }
 0x106   : >> { %v997_v11 = vadd.f32 %v623_v61, %v390_v10  ;;  %v722_v13 = vmul.f32 %v995_v7, %v995_v7 }
 0x107   : >> { %v925_v12 = vpack.c.bf16 %v996_v9, %v994_v4  ;;  %v725_v23 = vmul.f32 %v996_v9, %v996_v9 }
 0x108   : >> { %v920_v14 = vpack.c.bf16 %v997_v11, %v995_v7  ;;  %v706_v15 = vadd.f32 %v997_v11, %v995_v7  ;;  %v723_v16 = vmul.f32 %v997_v11, %v997_v11 }
 0x109   : >> { %932 = vst [vmem:[%s1215_s10 + $0x8] sm:$0xff] %v925_v12  }
 0x10a   : >> { %921 = vst [vmem:[%s1215_s10] sm:$0xff] %v920_v14   ;;  %v707_v18 = vadd.f32 %v994_v4, %v706_v15  ;;  %v730_v19 = vadd.f32 %v723_v16, %v722_v13  ;;  %v972_v20 = vpop.f32.mrb[4].mxu1 }
 0x10b   : >> { %v998_v21 = vadd.f32 %v992_v62, %v972_v20  ;;  %v403_v22 = vpop.f32.mrb[5].mxu1 }
 0x10c   : >> { %v731_v24 = vadd.f32 %v730_v19, %v724_v17  ;;  %v999_v25 = vadd.f32 %v636_v63, %v403_v22  ;;  %v708_v26 = vadd.f32 %v996_v9, %v707_v18  ;;  %v973_v27 = vpop.f32.mrb[6].mxu1 }
 0x10d   : >> { %v914_v28 = vpack.c.bf16 %v998_v21, %v998_v21  ;;  %v1000_v29 = vadd.f32 %v993_v3, %v973_v27  ;;  %v406_v30 = vpop.f32.mrb[7].mxu1  ;;  %v728_v43 = vmul.f32 %v998_v21, %v998_v21 }
 0x10e   : >> { %v709_v31 = vadd.f32 %v999_v25, %v708_v26  ;;  %v726_v32 = vmul.f32 %v999_v25, %v999_v25  ;;  %v732_v33 = vadd.f32 %v731_v24, %v725_v23  ;;  %v1001_v35 = vadd.f32 %v639_v6, %v406_v30 }
 0x10f   : >> { %699 = vst [vmem:[%s1215_s10 + $0x18] sm:$0xf] %v914_v28  ;;  %v915_v36 = vpack.c.bf16 %v1000_v29, %v1000_v29  ;;  %v729_v42 = vmul.f32 %v1000_v29, %v1000_v29  ;;  %v713_v46 = vsel %vm700_vm3, %v1000_v29, 0.0 }
 0x110   : >> { %v733_v37 = vadd.f32 %v732_v33, %v726_v32  ;;  %v930_v38 = vpack.c.bf16 %v1001_v35, %v999_v25  ;;  %v710_v39 = vadd.f32 %v1001_v35, %v709_v31  ;;  %v727_v40 = vmul.f32 %v1001_v35, %v1001_v35 }
 0x111   : >> { %v704_v41 = vsel %vm702_vm5, %v915_v36, %v703_v34  ;;  %v736_v49 = vsel %vm700_vm3, %v729_v42, 0.0 }
 0x112   : >> { %705 = vst [vmem:[%s1215_s10 + $0x1c] sm:$0x1] %v704_v41  ;;  %933 = vst [vmem:[%s1215_s10 + $0x10] sm:$0xff] %v930_v38   ;;  %v711_v44 = vadd.f32 %v998_v21, %v710_v39  ;;  %v734_v45 = vadd.f32 %v733_v37, %v727_v40 }
 0x114   : >> { %v714_v47 = vadd.f32 %v713_v46, %v711_v44  ;;  %v735_v48 = vadd.f32 %v734_v45, %v728_v43 }
 0x116   : >> { %v715_v50 = vrot.slane %v714_v47, 4  ;;  %v737_v51 = vadd.f32 %v736_v49, %v735_v48 }
 0x118   : >> { %v716_v52 = vadd.f32 %v715_v50, %v714_v47  ;;  %v738_v53 = vrot.slane %v737_v51, 4 }
 0x11a   : >> { %v717_v54 = vrot.slane %v716_v52, 2  ;;  %v739_v55 = vadd.f32 %v738_v53, %v737_v51 }
 0x11c   : >> { %v718_v56 = vadd.f32 %v717_v54, %v716_v52  ;;  %v740_v57 = vrot.slane %v739_v55, 2 }
 0x11e   : >> { %v719_v58 = vrot.slane %v718_v56, 1  ;;  %v741_v59 = vadd.f32 %v740_v57, %v739_v55 }
 0x120   : >> { %v720_v60 = vadd.f32 %v719_v58, %v718_v56  ;;  %v742_v61 = vrot.slane %v741_v59, 1  ;;  %187 = sbr.rel (!%p185_p4) target bundleno = 18 (0x12), region = 80 }
 0x122   : >> { %v721_v62 = vadd.f32 %v1092_v1, %v720_v60   ;;  %v743_v63 = vadd.f32 %v742_v61, %v741_v59 }
 0x124   : >> { %v744_v2 = vadd.f32 %v1088_v0, %v743_v63   ;;  %v1245_v1 = vmov %v721_v62  ;;  %745 = vst [vmem:[%s1129_s19] sm:$0x1] (%p185_p4), %v721_v62 }
 0x126   : >> { %v1244_v0 = vmov %v744_v2  ;;  %746 = vst [vmem:[%s1129_s19 + $0x1] sm:$0x1] (%p185_p4), %v744_v2 }
 0x127 PF: > { %s14_s12 = sadd.s32 1, %s1084_s12  }
 0x128   : > { %p11_p5 = scmp.ge.s32.totalorder %s14_s12, 4  }
 0x12a   :  { %13 = sbr.rel (!%p11_p5) target bundleno = 1 (0x1), region = 91 }

// kernel: cars_cnn_generator.9
= control target key start
LH: loop header
LB: loop body
LE: loop exit
PB: predicated region body
PF: predicated region fallthrough
CT: control target
= control target key end

     0   :  { %s1340_s9 = smov 0   ;;  %s1549_s0 = inlined_call_operand.vmem [shape: bf16[2,66,114,4], index: 0, kind: input, shape index: {}]   ;;  %s1550_s1 = inlined_call_operand.vmem [shape: bf16[16,128], index: 1, kind: input, shape index: {}]   ;;  %s1551_s2 = inlined_call_operand.vmem [shape: f32[2,65,113,128], index: 2, kind: output, shape index: {}]  }
   0x1 LB: > { %s1008_s10 = sadd.s32 4294967295, %s1319_s9   ;;  %p1012_p0 = scmp.ge.s32.totalorder %s1319_s9, 1  ;;  %s1319_s9 = sphi %s1340_s9, %s12_s9  }
   0x2   : > { %p112_p1 = scmp.lt.s32.totalorder %s1319_s9, 3 }
   0x4   : > { %p113_p2 = pnand %p1012_p0, %p112_p1 }
   0x5   : > { %p134_p3 = scmp.lt.s32.totalorder (!%p113_p2), %s1008_s10, 1  ;;  %s1358_s19 = smov (!%p113_p2), 0  }
   0x6   : > { %116 = sbr.rel (%p113_p2) target bundleno = 317 (0x13d), region = 28 }
   0xd   : > { %s1553_s10 = smov (!%p134_p3, %s1008_s10), 1 }
   0xe   : > { %s1243_s11 = smul.u32 3960, %s1553_s10 }
   0xf   : > { %s1244_s12 = smul.u32 7800, %s1553_s10 }
  0x10   : > { %s1351_s15 = scalar_lea.vmem %s1549_s0, %s1243_s11 }
  0x11   : > { %s1356_s18 = scalar_lea.vmem %s1551_s2, %s1244_s12 }
  0x12 LB: >> { %vm301_vm0 = vcmask 1041408   ;;  %v535_v0 = vld [vmem:[%s1550_s1 + $0x4] sm:$0x3]  ;;  %v1263_v2 = vld [vmem:[%s1550_s1] ss:$0 sps:$4 sm:$0xcc]   ;;  %s1323_s19 = sphi %s1358_s19, %s150_s19  }
  0x13   : >> { %1241 = vmatprep.subr.msk.bf16.mxu0 %vm301_vm0, %v535_v0  ;;  %v599_v1 = vsel %vm301_vm0, %v535_v0, 0  ;;  %s1083_s24 = smul.u32 60, %s1323_s19  ;;  %v275_v3 = vrot.slane %v1263_v2, 2  ;;  %v1266_v4 = vld [vmem:[%s1550_s1 + $0x4] ss:$0 sps:$4 sm:$0xcc]  }
  0x14   : >> { %1157 = vmatpush3.bf16.msra.mxu0 %v599_v1  ;;  %vm276_vm1 = vcmask 31744   ;;  %v169_v5 = vld [vmem:[%s1550_s1] sm:$0x3]  ;;  %v770_v9 = vrot.slane %v1266_v4, 2  ;;  %vm209_vm2 = vsmask.f32 7424 }
  0x15   : >> { %s1376_s27 = scalar_lea.vmem %s1351_s15, %s1083_s24  ;;  %1239 = vmatprep.subr.msk.bf16.mxu1 %vm301_vm0, %v275_v3  ;;  %v303_v7 = vsel %vm301_vm0, %v275_v3, 0  ;;  %v418_v26 = vsel %vm301_vm0, %v169_v5, 0  ;;  %s924_s30 = smul.u32 120, %s1323_s19 }
  0x16   : >> { %v1382_v6 = vld [vmem:[%s1376_s27 + $0x3c] sm:$0xff]   ;;  %v1387_v8 = vld [vmem:[%s1376_s27 + $0x44] sm:$0xff]   ;;  %1121 = vmatpush3.bf16.msra.mxu1 %v303_v7  ;;  %1242 = vmatprep.subr.msk.bf16.mxu0 %vm301_vm0, %v770_v9  ;;  %v796_v11 = vsel %vm301_vm0, %v770_v9, 0  ;;  %v1405_v15 = vld [vmem:[%s1376_s27 + $0x10] sm:$0xff]   ;;  %s150_s19 = sadd.s32 1, %s1323_s19  }
  0x17   : >> { %1158 = vmatprep.mubr.msk.bf16.mxu0 %vm276_vm1, %v1382_v6  ;;  %1240 = vmatprep.subr.msk.bf16.mxu1 %vm301_vm0, %v169_v5  ;;  %v1395_v10 = vld [vmem:[%s1376_s27] sm:$0xff]   ;;  %v1400_v12 = vld [vmem:[%s1376_s27 + $0x8] sm:$0xff]   ;;  %v226_v20 = vshll.u32 %v1405_v15, 16  ;;  %v1416_v21 = vld [vmem:[%s1376_s27 + $0x54] sm:$0xff]   ;;  %v230_v27 = vshrl.u32 %v1405_v15, 16  ;;  %v715_v36 = vshll.u32 %v1382_v6, 16  ;;  %s1526_s3 = scalar_lea.vmem %s1356_s18, %s924_s30 }
  0x18   : >> { %1159 = vmatmul.mubr.msk.bf16.vlgmr.msra.gmra.mrb[0].mxu0 %vm276_vm1, %v1387_v8  ;;  %v211_v13 = vshrl.u32 %v1395_v10, 16  ;;  %v213_v14 = vshll.u32 %v1395_v10, 16  ;;  %v1408_v16 = vld [vmem:[%s1376_s27 + $0x4c] sm:$0xff]   ;;  %v218_v17 = vshll.u32 %v1400_v12, 16  ;;  %v222_v18 = vshrl.u32 %v1400_v12, 16  ;;  %v1419_v23 = vld [vmem:[%s1376_s27 + $0x18] sm:$0xff]  }
  0x19   : >> { %1175 = vmatpush3.bf16.msra.mxu0 %v796_v11  ;;  %1162 = vmatprep.mubr.msk.bf16.mxu0 %vm276_vm1, %v1408_v16  ;;  %v228_v25 = vrot.slane %v226_v20, 1  ;;  %v1424_v28 = vld [vmem:[%s1376_s27 + $0x20] sm:$0xff]   ;;  %v234_v30 = vshll.u32 %v1419_v23, 16  ;;  %v238_v31 = vshrl.u32 %v1419_v23, 16  ;;  %v1442_v40 = vld [vmem:[%s1376_s27 + $0x28] sm:$0xff]   ;;  %v1446_v42 = vld [vmem:[%s1376_s27 + $0x30] sm:$0xff]  }
  0x1a   : >> { %v215_v19 = vrot.slane %v213_v14, 1  ;;  %v220_v22 = vrot.slane %v218_v17, 1  ;;  %v242_v34 = vshll.u32 %v1424_v28, 16  ;;  %v1433_v35 = vld [vmem:[%s1376_s27 + $0x5c] sm:$0xff]   ;;  %v246_v41 = vshrl.u32 %v1424_v28, 16  ;;  %v1451_v45 = vld [vmem:[%s1376_s27 + $0x64] sm:$0xff]  }
  0x1b   : >> { %v232_v33 = vor.u32 %v230_v27, %v228_v25  ;;  %v236_v38 = vrot.slane %v234_v30, 1  ;;  %v250_v47 = vshll.u32 %v1442_v40, 16  ;;  %v713_v48 = vshrl.u32 %v1382_v6, 16  ;;  %v1456_v49 = vld [vmem:[%s1376_s27 + $0x6c] sm:$0xff]   ;;  %p147_p4 = scmp.ge.s32.totalorder %s150_s19, 65  }
  0x1c   : >> { %v216_v24 = vor.u32 %v215_v19, %v211_v13  ;;  %v224_v29 = vor.u32 %v222_v18, %v220_v22  ;;  %v244_v39 = vrot.slane %v242_v34, 1  ;;  %v717_v50 = vrot.slane %v715_v36, 1  ;;  %v1463_v56 = vld [vmem:[%s1376_s27 + $0x38] ss:$0 sps:$4 sm:$0x11]  }
  0x1d   : >> { %v237_v43 = vsel %vm209_vm2, %v232_v33, %v236_v38  ;;  %v240_v44 = vor.u32 %v238_v31, %v236_v38  ;;  %v252_v51 = vrot.slane %v250_v47, 1  ;;  %v258_v52 = vshll.u32 %v1446_v42, 16  ;;  %v1277_v1 = vld [vmem:[%s1376_s27 + $0x74] ss:$0 sps:$4 sm:$0x11]  }
  0x1e   : >> { %v221_v32 = vsel %vm209_vm2, %v216_v24, %v220_v22  ;;  %v229_v37 = vsel %vm209_vm2, %v224_v29, %v228_v25  ;;  %v248_v46 = vor.u32 %v246_v41, %v244_v39  ;;  %v719_v53 = vshll.u32 %v1387_v8, 16 }
  0x1f   : >> { %1122 = vmatprep.mubr.msk.bf16.mxu1 %vm276_vm1, %v221_v32  ;;  %v245_v54 = vsel %vm209_vm2, %v240_v44, %v244_v39  ;;  %v254_v55 = vshrl.u32 %v1442_v40, 16  ;;  %v262_v58 = vshrl.u32 %v1446_v42, 16  ;;  %v266_v59 = vshll.u32 %v1463_v56, 16 }
  0x20   : >> { %1163 = vmatmul.mubr.msk.bf16.gmra.mrb[4].mxu0 %vm276_vm1, %v1416_v21  ;;  %1123 = vmatmul.mubr.msk.bf16.vlgmr.msra.gmra.mrb[0].mxu1 %vm276_vm1, %v229_v37  ;;  %v253_v57 = vsel %vm209_vm2, %v248_v46, %v252_v51  ;;  %v260_v60 = vrot.slane %v258_v52, 1  ;;  %v718_v61 = vor.u32 %v717_v50, %v713_v48  ;;  %v721_v62 = vrot.slane %v719_v53, 1 }
  0x21   : >> { %1166 = vmatprep.mubr.msk.bf16.mxu0 %vm276_vm1, %v1433_v35  ;;  %1139 = vmatpush3.bf16.msra.mxu1 %v418_v26  ;;  %v256_v63 = vor.u32 %v254_v55, %v252_v51  ;;  %v726_v0 = vshll.u32 %v1408_v16, 16  ;;  %v268_v3 = vrot.slane %v266_v59, 1  ;;  %v723_v4 = vshrl.u32 %v1387_v8, 16 }
  0x22   : >> { %1126 = vmatprep.mubr.msk.bf16.mxu1 %vm276_vm1, %v237_v43  ;;  %v264_v2 = vor.u32 %v262_v58, %v260_v60  ;;  %v722_v5 = vsel %vm209_vm2, %v718_v61, %v721_v62  ;;  %v730_v6 = vshrl.u32 %v1408_v16, 16  ;;  %v733_v7 = vshll.u32 %v1416_v21, 16 }
  0x23   : >> { %v261_v9 = vsel %vm209_vm2, %v256_v63, %v260_v60  ;;  %v728_v11 = vrot.slane %v726_v0, 1  ;;  %v725_v14 = vor.u32 %v723_v4, %v721_v62  ;;  %v740_v16 = vshll.u32 %v1433_v35, 16 }
  0x24   : >> { %v269_v13 = vsel %vm209_vm2, %v264_v2, %v268_v3  ;;  %v735_v8 = vrot.slane %v733_v7, 1  ;;  %v737_v19 = vshrl.u32 %v1416_v21, 16  ;;  %v270_v20 = vshrl.u32 %v1463_v56, 16 }
  0x25   : >> { %v732_v17 = vor.u32 %v730_v6, %v728_v11  ;;  %v729_v18 = vsel %vm209_vm2, %v725_v14, %v728_v11  ;;  %v744_v24 = vshrl.u32 %v1433_v35, 16  ;;  %v747_v25 = vshll.u32 %v1451_v45, 16 }
  0x26   : >> { %v742_v26 = vrot.slane %v740_v16, 1  ;;  %v739_v27 = vor.u32 %v737_v19, %v735_v8  ;;  %v754_v21 = vshll.u32 %v1456_v49, 16  ;;  %v751_v32 = vshrl.u32 %v1451_v45, 16 }
  0x27   : >> { %v736_v22 = vsel %vm209_vm2, %v732_v17, %v735_v8  ;;  %v749_v30 = vrot.slane %v747_v25, 1  ;;  %v758_v34 = vshrl.u32 %v1456_v49, 16  ;;  %v761_v35 = vshll.u32 %v1277_v1, 16 }
  0x28   : >> { %1167 = vmatmul.mubr.msk.bf16.gmra.mrb[8].mxu0 %vm276_vm1, %v1451_v45  ;;  %1127 = vmatmul.mubr.msk.bf16.gmra.mrb[4].mxu1 %vm276_vm1, %v245_v54  ;;  %v746_v29 = vor.u32 %v744_v24, %v742_v26  ;;  %v743_v31 = vsel %vm209_vm2, %v739_v27, %v742_v26  ;;  %v756_v36 = vrot.slane %v754_v21, 1 }
  0x29   : >> { %1170 = vmatprep.mubr.msk.bf16.mxu0 %vm276_vm1, %v1456_v49  ;;  %1130 = vmatprep.mubr.msk.bf16.mxu1 %vm276_vm1, %v253_v57  ;;  %v753_v37 = vor.u32 %v751_v32, %v749_v30  ;;  %v763_v38 = vrot.slane %v761_v35, 1 }
  0x2a   : >> { %v750_v33 = vsel %vm209_vm2, %v746_v29, %v749_v30 }
  0x2b   : >> { %v757_v39 = vsel %vm209_vm2, %v753_v37, %v756_v36 }
  0x30   : >> { %1171 = vmatmul.mubr.msk.bf16.gmra.mrb[12].mxu0 %vm276_vm1, %v1277_v1  ;;  %1131 = vmatmul.mubr.msk.bf16.gmra.mrb[8].mxu1 %vm276_vm1, %v261_v9 }
  0x31   : >> { %1176 = vmatprep.mubr.msk.bf16.mxu0 %vm276_vm1, %v722_v5  ;;  %1134 = vmatprep.mubr.msk.bf16.mxu1 %vm276_vm1, %v269_v13 }
  0x38   : >> { %1177 = vmatmul.mubr.msk.bf16.vlgmr.msra.gmra.mrb[0].mxu0 %vm276_vm1, %v729_v18  ;;  %1135 = vmatmul.mubr.msk.bf16.gmra.mrb[12].mxu1 %vm276_vm1, %v270_v20 }
  0x39   : >> { %1180 = vmatprep.mubr.msk.bf16.mxu0 %vm276_vm1, %v736_v22  ;;  %1140 = vmatprep.mubr.msk.bf16.mxu1 %vm276_vm1, %v1395_v10  ;;  %v760_v10 = vor.u32 %v758_v34, %v756_v36 }
  0x3b   : >> { %v764_v41 = vsel %vm209_vm2, %v760_v10, %v763_v38 }
  0x40   : >> { %1181 = vmatmul.mubr.msk.bf16.gmra.mrb[4].mxu0 %vm276_vm1, %v743_v31  ;;  %1141 = vmatmul.mubr.msk.bf16.vlgmr.msra.gmra.mrb[0].mxu1 %vm276_vm1, %v1400_v12  ;;  %v765_v12 = vshrl.u32 %v1277_v1, 16 }
  0x41   : >> { %1184 = vmatprep.mubr.msk.bf16.mxu0 %vm276_vm1, %v750_v33  ;;  %1144 = vmatprep.mubr.msk.bf16.mxu1 %vm276_vm1, %v1405_v15 }
  0x48   : >> { %1185 = vmatmul.mubr.msk.bf16.gmra.mrb[8].mxu0 %vm276_vm1, %v757_v39  ;;  %1145 = vmatmul.mubr.msk.bf16.gmra.mrb[4].mxu1 %vm276_vm1, %v1419_v23 }
  0x49   : >> { %1188 = vmatprep.mubr.msk.bf16.mxu0 %vm276_vm1, %v764_v41  ;;  %1148 = vmatprep.mubr.msk.bf16.mxu1 %vm276_vm1, %v1424_v28 }
  0x50   : >> { %1189 = vmatmul.mubr.msk.bf16.gmra.mrb[12].mxu0 %vm276_vm1, %v765_v12  ;;  %1149 = vmatmul.mubr.msk.bf16.gmra.mrb[8].mxu1 %vm276_vm1, %v1442_v40 }
  0x51   : >> { %1152 = vmatprep.mubr.msk.bf16.mxu1 %vm276_vm1, %v1446_v42 }
  0x58   : >> { %1153 = vmatmul.mubr.msk.bf16.gmra.mrb[12].mxu1 %vm276_vm1, %v1463_v56 }
 0x10b   : >> { %v1178_v15 = vpop.f32.mrb[0].mxu0 }
 0x10c   : >> { %v832_v43 = vpop.f32.mrb[1].mxu0 }
 0x10d   : >> { %v1179_v44 = vpop.f32.mrb[2].mxu0 }
 0x10e   : >> { %v835_v45 = vpop.f32.mrb[3].mxu0 }
 0x113   : >> { %v1182_v23 = vpop.f32.mrb[4].mxu0  ;;  %v1142_v28 = vpop.f32.mrb[0].mxu1 }
 0x114   : >> { %v848_v46 = vpop.f32.mrb[5].mxu0  ;;  %v1192_v48 = vadd.f32 %v1178_v15, %v1142_v28  ;;  %v454_v49 = vpop.f32.mrb[1].mxu1 }
 0x115   : >> { %v1183_v47 = vpop.f32.mrb[6].mxu0  ;;  %v1193_v51 = vadd.f32 %v832_v43, %v454_v49  ;;  %v1143_v40 = vpop.f32.mrb[2].mxu1 }
 0x116   : >> { %v851_v50 = vpop.f32.mrb[7].mxu0  ;;  %1279 = vtanh.f32 %v1192_v48  ;;  %v1194_v52 = vadd.f32 %v1179_v44, %v1143_v40  ;;  %v457_v42 = vpop.f32.mrb[3].mxu1 }
 0x117   : >> { %1281 = vtanh.f32 %v1193_v51  ;;  %v1195_v53 = vadd.f32 %v835_v45, %v457_v42 }
 0x118   : >> { %1283 = vtanh.f32 %v1194_v52 }
 0x119   : >> { %1285 = vtanh.f32 %v1195_v53 }
 0x11b   : >> { %v1186_v54 = vpop.f32.mrb[8].mxu0  ;;  %v1146_v56 = vpop.f32.mrb[4].mxu1 }
 0x11c   : >> { %v864_v55 = vpop.f32.mrb[9].mxu0  ;;  %v1196_v58 = vadd.f32 %v1182_v23, %v1146_v56  ;;  %v470_v59 = vpop.f32.mrb[5].mxu1 }
 0x11d   : >> { %v1187_v57 = vpop.f32.mrb[10].mxu0  ;;  %v1197_v61 = vadd.f32 %v848_v46, %v470_v59  ;;  %v1147_v62 = vpop.f32.mrb[6].mxu1 }
 0x11e   : >> { %v867_v60 = vpop.f32.mrb[11].mxu0  ;;  %1287 = vtanh.f32 %v1196_v58  ;;  %v1198_v63 = vadd.f32 %v1183_v47, %v1147_v62  ;;  %v473_v0 = vpop.f32.mrb[7].mxu1 }
 0x11f   : >> { %1289 = vtanh.f32 %v1197_v61  ;;  %v1199_v1 = vadd.f32 %v851_v50, %v473_v0 }
 0x120   : >> { %v1280_v2 = vpop.eup %1279  ;;  %1291 = vtanh.f32 %v1198_v63 }
 0x121   : >> { %v1282_v3 = vpop.eup %1281  ;;  %928 = vst [vmem:[%s1526_s3 + $0x10] sm:$0xff] %v1280_v2  ;;  %1293 = vtanh.f32 %v1199_v1 }
 0x122   : >> { %v1284_v5 = vpop.eup %1283  ;;  %926 = vst [vmem:[%s1526_s3] sm:$0xff] %v1282_v3 }
 0x123   : >> { %v1190_v4 = vpop.f32.mrb[12].mxu0  ;;  %v1286_v7 = vpop.eup %1285  ;;  %929 = vst [vmem:[%s1526_s3 + $0x18] sm:$0xff] %v1284_v5 }
 0x124   : >> { %v880_v6 = vpop.f32.mrb[13].mxu0  ;;  %v1150_v9 = vpop.f32.mrb[8].mxu1  ;;  %927 = vst [vmem:[%s1526_s3 + $0x8] sm:$0xff] %v1286_v7 }
 0x125   : >> { %v1191_v11 = vpop.f32.mrb[14].mxu0  ;;  %v1200_v13 = vadd.f32 %v1186_v54, %v1150_v9  ;;  %v486_v14 = vpop.f32.mrb[9].mxu1 }
 0x126   : >> { %v883_v17 = vpop.f32.mrb[15].mxu0  ;;  %v1201_v8 = vadd.f32 %v864_v55, %v486_v14  ;;  %v1151_v16 = vpop.f32.mrb[10].mxu1 }
 0x127   : >> { %1295 = vtanh.f32 %v1200_v13  ;;  %v1202_v18 = vadd.f32 %v1187_v57, %v1151_v16  ;;  %v489_v19 = vpop.f32.mrb[11].mxu1 }
 0x128   : >> { %1297 = vtanh.f32 %v1201_v8  ;;  %v1203_v20 = vadd.f32 %v867_v60, %v489_v19  ;;  %v1288_v22 = vpop.eup %1287 }
 0x129   : >> { %1299 = vtanh.f32 %v1202_v18  ;;  %v1290_v24 = vpop.eup %1289  ;;  %932 = vst [vmem:[%s1526_s3 + $0x30] sm:$0xff] %v1288_v22 }
 0x12a   : >> { %1301 = vtanh.f32 %v1203_v20  ;;  %v1292_v25 = vpop.eup %1291  ;;  %930 = vst [vmem:[%s1526_s3 + $0x20] sm:$0xff] %v1290_v24 }
 0x12b   : >> { %v1294_v26 = vpop.eup %1293  ;;  %933 = vst [vmem:[%s1526_s3 + $0x38] sm:$0xff] %v1292_v25  ;;  %v1154_v27 = vpop.f32.mrb[12].mxu1 }
 0x12c   : >> { %931 = vst [vmem:[%s1526_s3 + $0x28] sm:$0xff] %v1294_v26  ;;  %v1204_v29 = vadd.f32 %v1190_v4, %v1154_v27  ;;  %v502_v30 = vpop.f32.mrb[13].mxu1 }
 0x12d   : >> { %v1205_v21 = vadd.f32 %v880_v6, %v502_v30  ;;  %v1155_v31 = vpop.f32.mrb[14].mxu1 }
 0x12e   : >> { %1303 = vtanh.f32 %v1204_v29  ;;  %v505_v32 = vpop.f32.mrb[15].mxu1 }
 0x12f   : >> { %1305 = vtanh.f32 %v1205_v21  ;;  %v1206_v33 = vadd.f32 %v883_v17, %v505_v32 }
 0x131   : >> { %v1296_v34 = vpop.eup %1295  ;;  %1307 = vtanh.f32 %v1206_v33 }
 0x132   : >> { %v1298_v35 = vpop.eup %1297  ;;  %936 = vst [vmem:[%s1526_s3 + $0x50] sm:$0xff] %v1296_v34 }
 0x133   : >> { %v1300_v36 = vpop.eup %1299  ;;  %934 = vst [vmem:[%s1526_s3 + $0x40] sm:$0xff] %v1298_v35 }
 0x134   : >> { %v1302_v37 = vpop.eup %1301  ;;  %937 = vst [vmem:[%s1526_s3 + $0x58] sm:$0xff] %v1300_v36 }
 0x135   : >> { %935 = vst [vmem:[%s1526_s3 + $0x48] sm:$0xff] %v1302_v37 }
 0x136   : > { %149 = sbr.rel (!%p147_p4) target bundleno = 18 (0x12), region = 68 }
 0x138   : >> { %v1304_v10 = vpop.eup %1303 }
 0x139   : >> { %v1306_v38 = vpop.eup %1305  ;;  %940 = vst [vmem:[%s1526_s3 + $0x70] sm:$0x1] %v1304_v10 }
 0x13a   : >> { %938 = vst [vmem:[%s1526_s3 + $0x60] sm:$0xff] %v1306_v38 }
 0x13b   : >> { %v1308_v39 = vpop.eup %1307 }
 0x13c   : >> { %939 = vst [vmem:[%s1526_s3 + $0x68] sm:$0xff] %v1308_v39 }
 0x13d PF: > { %s12_s9 = sadd.s32 1, %s1319_s9  }
 0x13e   : > { %p9_p5 = scmp.ge.s32.totalorder %s12_s9, 4  }
 0x140   :  { %11 = sbr.rel (!%p9_p5) target bundleno = 1 (0x1), region = 79 }

</bundles_post_ra>
